<compile_context>
chip_gen: v5e
topology: v5e:2x2
jax: 0.10.0
libtpu: 0.0.40
codegen_flags: <defaults>
</compile_context>

<pallas_src>
import math
from functools import partial

import jax
import jax.numpy as jnp
from jax.experimental import pallas as pl
from jax.experimental.pallas import tpu as pltpu


# ---------------------------------------------------------------------------
# Shared per-step ABCGRU_layer math on batch-flattened activations.
# ---------------------------------------------------------------------------
def _layer_core(x2, h2, w_x, w_sx, w_h, bias, *, batch, n):
    """One ABCGRU_layer step.

    x2:   (B*N, C)    current input
    h2:   (B*N, Hd)   previous hidden state
    w_x:  (C, 2*Hd)   [W_ha1 | W_xh]
    w_sx: (C, 2*Hd)   [W_xr  | W_xz]
    w_h:  (2*Hd, Hd)  [W_ha2 ; W_hh]
    bias: (3, 2*Hd)   rows = [0|b_xh], [b_ha2|b_hh], [b_xr|b_xz]
    returns h_new: (B*N, Hd)
    """
    f32 = jnp.float32
    hd = w_h.shape[-1]

    # x path (fused): [lhs | xh] = x @ [W_ha1 | W_xh] + [0 | b_xh]
    xp = jnp.dot(x2, w_x, preferred_element_type=f32) + bias[0:1, :]
    lhs = xp[:, :hd]                       # (BN, Hd)
    xh = xp[:, hd:]                        # (BN, Hd)

    # h path: rhs = H_pre @ W_ha2 + b_ha2
    rhs = jnp.dot(h2, w_h[:hd, :], preferred_element_type=f32) + bias[1:2, :hd]

    # Attention per batch element (B is tiny and static -> Python unroll).
    sx_parts = []
    for b in range(batch):
        lo, hi = b * n, (b + 1) * n
        # S = lhs @ rhs^T without materializing the transpose.
        s = jax.lax.dot_general(lhs[lo:hi, :], rhs[lo:hi, :],
                                (((1,), (1,)), ((), ())),
                                preferred_element_type=f32)      # (N, N)
        # leaky_relu (default negative_slope = 0.01)
        s = jnp.where(s > 0, s, 0.01 * s)
        # softmax along last dim (EUP reciprocal for the normalization)
        s = s - jnp.max(s, axis=-1, keepdims=True)
        e = jnp.exp(s)
        s_norm = e * pl.reciprocal(jnp.sum(e, axis=-1, keepdims=True),
                                   approx=True)
        sx_parts.append(jnp.dot(s_norm, x2[lo:hi, :],
                                preferred_element_type=f32))     # (N, C)
    sx = jnp.concatenate(sx_parts, axis=0)                       # (BN, C)

    # Gates (fused): [rt | zt] = sigmoid(sx @ [W_xr | W_xz] + [b_xr | b_xz])
    g = jnp.dot(sx, w_sx, preferred_element_type=f32) + bias[2:3, :]
    rt = jax.nn.sigmoid(g[:, :hd])
    zt = jax.nn.sigmoid(g[:, hd:])

    # Candidate hidden state.
    hh = jnp.dot(rt * h2, w_h[hd:, :], preferred_element_type=f32) + bias[1:2, hd:]
    h_cand = jnp.tanh(xh + hh)

    return zt * h2 + (1.0 - zt) * h_cand


# ---------------------------------------------------------------------------
# Encoder kernel: grid=(T,), H carried in VMEM scratch, written out at t==T-1.
# ---------------------------------------------------------------------------
def encoder_kernel(x_ref, wxc_ref, wh_ref, b_ref, h_ref, h_scr, *, batch, n):
    t = pl.program_id(0)

    @pl.when(t == 0)
    def _():
        h_scr[...] = jnp.zeros_like(h_scr)

    h_new = _layer_core(x_ref[0], h_scr[...],
                        wxc_ref[0, 0], wxc_ref[0, 1], wh_ref[0], b_ref[0],
                        batch=batch, n=n)
    h_scr[...] = h_new

    @pl.when(t == pl.num_programs(0) - 1)
    def _():
        h_ref[...] = h_new


# ---------------------------------------------------------------------------
# Decoder kernel: grid=(P,), H and fed-back output in VMEM scratch,
# y written into a lane-packed (B*N, P*C) slab held resident in VMEM.
# ---------------------------------------------------------------------------
def decoder_kernel(h0_ref, wxc_ref, wh_ref, b_ref, wy_ref, by_ref,
                   y_ref, h_scr, x_scr, *, batch, n, c, pre_length):
    s = pl.program_id(0)

    @pl.when(s == 0)
    def _():
        h_scr[...] = h0_ref[...]
        x_scr[...] = jnp.zeros_like(x_scr)

    h_new = _layer_core(x_scr[...], h_scr[...],
                        wxc_ref[0, 0], wxc_ref[0, 1], wh_ref[0], b_ref[0],
                        batch=batch, n=n)
    y = jnp.dot(h_new, wy_ref[0], preferred_element_type=jnp.float32) + by_ref[0]

    h_scr[...] = h_new
    x_scr[...] = y

    # Static-slice predicated stores into the resident output slab.
    for k in range(pre_length):
        @pl.when(s == k)
        def _(k=k):
            y_ref[:, k * c:(k + 1) * c] = y


# ---------------------------------------------------------------------------
# pallas_call wrappers.
# ---------------------------------------------------------------------------
def run_encoder(X_t, enc, batch, n):
    T, BN, C = X_t.shape
    Hd = enc["wh"].shape[-1]
    return pl.pallas_call(
        partial(encoder_kernel, batch=batch, n=n),
        out_shape=jax.ShapeDtypeStruct((BN, Hd), jnp.float32),
        grid_spec=pltpu.PrefetchScalarGridSpec(
            num_scalar_prefetch=0,
            grid=(T,),
            in_specs=[
                pl.BlockSpec((1, BN, C), lambda t: (t, 0, 0)),
                pl.BlockSpec((1, 2, C, 2 * Hd), lambda t: (t, 0, 0, 0)),
                pl.BlockSpec((1, 2 * Hd, Hd), lambda t: (t, 0, 0)),
                pl.BlockSpec((1, 3, 2 * Hd), lambda t: (t, 0, 0)),
            ],
            out_specs=pl.BlockSpec((BN, Hd), lambda t: (0, 0)),
            scratch_shapes=[pltpu.VMEM((BN, Hd), jnp.float32)],
        ),
        compiler_params=pltpu.CompilerParams(
            dimension_semantics=("arbitrary",)),
    )(X_t, enc["wxc"], enc["wh"], enc["b"])


def run_decoder(h0, dec, batch, n, c):
    BN, Hd = h0.shape
    P = dec["wxc"].shape[0]
    return pl.pallas_call(
        partial(decoder_kernel, batch=batch, n=n, c=c, pre_length=P),
        out_shape=jax.ShapeDtypeStruct((BN, P * c), jnp.float32),
        grid_spec=pltpu.PrefetchScalarGridSpec(
            num_scalar_prefetch=0,
            grid=(P,),
            in_specs=[
                pl.BlockSpec((BN, Hd), lambda s: (0, 0)),            # H from encoder
                pl.BlockSpec((1, 2, c, 2 * Hd), lambda s: (s, 0, 0, 0)),
                pl.BlockSpec((1, 2 * Hd, Hd), lambda s: (s, 0, 0)),
                pl.BlockSpec((1, 3, 2 * Hd), lambda s: (s, 0, 0)),
                pl.BlockSpec((1, Hd, c), lambda s: (s, 0, 0)),
                pl.BlockSpec((1, 1, c), lambda s: (s, 0, 0)),
            ],
            out_specs=pl.BlockSpec((BN, P * c), lambda s: (0, 0)),
            scratch_shapes=[
                pltpu.VMEM((BN, Hd), jnp.float32),   # recurrent H
                pltpu.VMEM((BN, c), jnp.float32),    # fed-back output
            ],
        ),
        compiler_params=pltpu.CompilerParams(
            dimension_semantics=("arbitrary",)),
    )(h0, dec["wxc"], dec["wh"], dec["b"], dec["wy"], dec["by"])


# ---------------------------------------------------------------------------
# Full ABCGRU forward.  X: (B, N, T, C) -> (B, N, pre_length, C)
# ---------------------------------------------------------------------------
def abcgru_forward(X, enc_pack, dec_pack):
    B, N, T, C = X.shape
    P = dec_pack["wxc"].shape[0]
    # Layout: put time first and fold batch into matmul rows.
    X_t = jnp.transpose(X, (2, 0, 1, 3)).reshape(T, B * N, C)
    h = run_encoder(X_t, enc_pack, B, N)                    # (B*N, Hd)
    y_slab = run_decoder(h, dec_pack, B, N, C)              # (B*N, P*C)
    return y_slab.reshape(B, N, P, C)


# ---------------------------------------------------------------------------
# Deterministic parameter init (PyTorch nn.Linear style) + packing.
# Weights stored pre-transposed as (in, out); biases as (out,).
# ---------------------------------------------------------------------------
def init_layer_params(key, input_size, hidden_size):
    keys = jax.random.split(key, 14)

    def lin(kw, kb, fan_in, fan_out, bias=True):
        bound = 1.0 / math.sqrt(fan_in)
        w = jax.random.uniform(kw, (fan_in, fan_out), jnp.float32, -bound, bound)
        b = (jax.random.uniform(kb, (fan_out,), jnp.float32, -bound, bound)
             if bias else None)
        return w, b

    w_xr, b_xr = lin(keys[0], keys[1], input_size, hidden_size)
    w_xz, b_xz = lin(keys[2], keys[3], input_size, hidden_size)
    w_xh, b_xh = lin(keys[4], keys[5], input_size, hidden_size)
    w_hh, b_hh = lin(keys[6], keys[7], hidden_size, hidden_size)
    w_ha1, _ = lin(keys[8], keys[9], input_size, hidden_size, bias=False)
    w_ha2, b_ha2 = lin(keys[10], keys[11], hidden_size, hidden_size)
    w_y, b_y = lin(keys[12], keys[13], hidden_size, input_size)

    return dict(w_ha1=w_ha1, w_ha2=w_ha2, b_ha2=b_ha2,
                w_xr=w_xr, b_xr=b_xr, w_xz=w_xz, b_xz=b_xz,
                w_xh=w_xh, b_xh=b_xh, w_hh=w_hh, b_hh=b_hh,
                w_y=w_y, b_y=b_y)


def pack_layer(p, hidden_size, with_output):
    Hd = hidden_size
    wxc = jnp.stack([
        jnp.concatenate([p["w_ha1"], p["w_xh"]], axis=1),   # applied to x
        jnp.concatenate([p["w_xr"], p["w_xz"]], axis=1),    # applied to sx
    ])                                                       # (2, C, 2Hd)
    wh = jnp.concatenate([p["w_ha2"], p["w_hh"]], axis=0)    # (2Hd, Hd)
    bias = jnp.stack([
        jnp.concatenate([jnp.zeros((Hd,), jnp.float32), p["b_xh"]]),
        jnp.concatenate([p["b_ha2"], p["b_hh"]]),
        jnp.concatenate([p["b_xr"], p["b_xz"]]),
    ])                                                       # (3, 2Hd)
    out = dict(wxc=wxc, wh=wh, b=bias)
    if with_output:
        out["wy"] = p["w_y"]                                 # (Hd, C)
        out["by"] = p["b_y"][None, :]                        # (1, C)
    return out


def stack_layers(packs):
    return {k: jnp.stack([p[k] for p in packs]) for k in packs[0]}


if __name__ == "__main__":
    # Small shapes consistent with the module: X is (B, N, T, C)
    B, N, T, C = 2, 16, 4, 8        # C = input_size, T = time_length
    hidden_size = 32                # output_size in ABCGRU.__init__
    pre_length = 3

    key = jax.random.PRNGKey(0)
    kx, kenc, kdec = jax.random.split(key, 3)

    X = jax.random.normal(kx, (B, N, T, C), jnp.float32)

    enc_keys = jax.random.split(kenc, T)
    dec_keys = jax.random.split(kdec, pre_length)
    enc_params = [init_layer_params(k, C, hidden_size) for k in enc_keys]
    dec_params = [init_layer_params(k, C, hidden_size) for k in dec_keys]

    enc_pack = stack_layers([pack_layer(p, hidden_size, False) for p in enc_params])
    dec_pack = stack_layers([pack_layer(p, hidden_size, True) for p in dec_params])

    fwd = jax.jit(abcgru_forward)
    ans = fwd(X, enc_pack, dec_pack)
    jax.block_until_ready(ans)

    assert ans.shape == (B, N, pre_length, C), ans.shape
    print("KERNEL_OK")
</pallas_src>

<mosaic_0001>
module attributes {stable_mosaic.version = 11 : i64} {
  func.func @encoder_kernel(%arg0: i32, %arg1: memref<1x32x8xf32, #tpu.memory_space<vmem>>, %arg2: memref<1x2x8x64xf32, #tpu.memory_space<vmem>>, %arg3: memref<1x64x32xf32, #tpu.memory_space<vmem>>, %arg4: memref<1x3x64xf32, #tpu.memory_space<vmem>>, %arg5: memref<32x32xf32, #tpu.memory_space<vmem>>, %arg6: memref<32x32xf32, #tpu.memory_space<vmem>>) attributes {dimension_semantics = [#tpu.dimension_semantics<arbitrary>], iteration_bounds = array<i64: 4>, scalar_prefetch = 0 : i64, scratch_operands = 1 : i64, tpu.core_type = #tpu.core_type<tc>, window_params = [{transform_indices = @transform_0, window_bounds = array<i64: 1, 32, 8>}, {transform_indices = @transform_1, window_bounds = array<i64: 1, 2, 8, 64>}, {transform_indices = @transform_2, window_bounds = array<i64: 1, 64, 32>}, {transform_indices = @transform_3, window_bounds = array<i64: 1, 3, 64>}, {pipeline_mode = #tpu.pipeline_mode<synchronous>, transform_indices = @transform_4, window_bounds = array<i64: 32, 32>}]} {
    %c0_i32 = arith.constant 0 : i32
    %0 = arith.cmpi eq, %arg0, %c0_i32 : i32
    %1 = arith.extui %0 : i1 to i32
    %c0_i32_0 = arith.constant 0 : i32
    %2 = arith.cmpi ne, %1, %c0_i32_0 : i32
    scf.if %2 {
      %cst_39 = arith.constant 0.000000e+00 : f32
      %99 = vector.broadcast %cst_39 : f32 to vector<32x32xf32>
      %c0_40 = arith.constant 0 : index
      %c0_41 = arith.constant 0 : index
      %100 = vector.load %arg6[%c0_40, %c0_41] : memref<32x32xf32, #tpu.memory_space<vmem>>, vector<32x32xf32>
      tpu.vector_store %arg6[%c0_40, %c0_41], %99 {strides = array<i32>} : memref<32x32xf32, #tpu.memory_space<vmem>>, vector<32x32xf32>,
    } else {
    }
    %c0 = arith.constant 0 : index
    %c0_1 = arith.constant 0 : index
    %c0_2 = arith.constant 0 : index
    %3 = vector.load %arg1[%c0, %c0_1, %c0_2] : memref<1x32x8xf32, #tpu.memory_space<vmem>>, vector<1x32x8xf32>
    %4 = vector.shape_cast %3 : vector<1x32x8xf32> to vector<32x8xf32>
    %c0_3 = arith.constant 0 : index
    %c0_4 = arith.constant 0 : index
    %5 = vector.load %arg6[%c0_3, %c0_4] : memref<32x32xf32, #tpu.memory_space<vmem>>, vector<32x32xf32>
    %c0_5 = arith.constant 0 : index
    %c0_6 = arith.constant 0 : index
    %c0_7 = arith.constant 0 : index
    %c0_8 = arith.constant 0 : index
    %6 = vector.load %arg2[%c0_5, %c0_6, %c0_7, %c0_8] : memref<1x2x8x64xf32, #tpu.memory_space<vmem>>, vector<1x1x8x64xf32>
    %7 = vector.shape_cast %6 : vector<1x1x8x64xf32> to vector<8x64xf32>
    %c0_9 = arith.constant 0 : index
    %c1 = arith.constant 1 : index
    %c0_10 = arith.constant 0 : index
    %c0_11 = arith.constant 0 : index
    %8 = vector.load %arg2[%c0_9, %c1, %c0_10, %c0_11] : memref<1x2x8x64xf32, #tpu.memory_space<vmem>>, vector<1x1x8x64xf32>
    %9 = vector.shape_cast %8 : vector<1x1x8x64xf32> to vector<8x64xf32>
    %c0_12 = arith.constant 0 : index
    %c0_13 = arith.constant 0 : index
    %c0_14 = arith.constant 0 : index
    %10 = vector.load %arg3[%c0_12, %c0_13, %c0_14] : memref<1x64x32xf32, #tpu.memory_space<vmem>>, vector<1x64x32xf32>
    %11 = vector.shape_cast %10 : vector<1x64x32xf32> to vector<64x32xf32>
    %c0_15 = arith.constant 0 : index
    %c0_16 = arith.constant 0 : index
    %c0_17 = arith.constant 0 : index
    %12 = vector.load %arg4[%c0_15, %c0_16, %c0_17] : memref<1x3x64xf32, #tpu.memory_space<vmem>>, vector<1x3x64xf32>
    %13 = vector.shape_cast %12 : vector<1x3x64xf32> to vector<3x64xf32>
    %cst = arith.constant dense<0.000000e+00> : vector<32x64xf32>
    %14 = tpu.matmul %4, %7, %cst {dimension_numbers = #tpu.dot_dimension_numbers<[1], [0], [0], [1], [0, 0, 1, 1], [], []>} : vector<32x8xf32>, vector<8x64xf32>, vector<32x64xf32> -> vector<32x64xf32>
    %15 = vector.extract_strided_slice %13 {offsets = [0, 0], sizes = [1, 64], strides = [1, 1]} : vector<3x64xf32> to vector<1x64xf32>
    %16 = vector.broadcast %15 : vector<1x64xf32> to vector<32x64xf32>
    %17 = arith.addf %14, %16 : vector<32x64xf32>
    %18 = vector.extract_strided_slice %17 {offsets = [0, 0], sizes = [32, 32], strides = [1, 1]} : vector<32x64xf32> to vector<32x32xf32>
    %19 = vector.extract_strided_slice %17 {offsets = [0, 32], sizes = [32, 32], strides = [1, 1]} : vector<32x64xf32> to vector<32x32xf32>
    %20 = vector.extract_strided_slice %11 {offsets = [0, 0], sizes = [32, 32], strides = [1, 1]} : vector<64x32xf32> to vector<32x32xf32>
    %cst_18 = arith.constant dense<0.000000e+00> : vector<32x32xf32>
    %21 = tpu.matmul %5, %20, %cst_18 {dimension_numbers = #tpu.dot_dimension_numbers<[1], [0], [0], [1], [0, 0, 1, 1], [], []>} : vector<32x32xf32>, vector<32x32xf32>, vector<32x32xf32> -> vector<32x32xf32>
    %22 = vector.extract_strided_slice %13 {offsets = [1, 0], sizes = [1, 32], strides = [1, 1]} : vector<3x64xf32> to vector<1x32xf32>
    %23 = vector.broadcast %22 : vector<1x32xf32> to vector<32x32xf32>
    %24 = arith.addf %21, %23 : vector<32x32xf32>
    %25 = vector.extract_strided_slice %18 {offsets = [0, 0], sizes = [16, 32], strides = [1, 1]} : vector<32x32xf32> to vector<16x32xf32>
    %26 = vector.extract_strided_slice %24 {offsets = [0, 0], sizes = [16, 32], strides = [1, 1]} : vector<32x32xf32> to vector<16x32xf32>
    %cst_19 = arith.constant dense<0.000000e+00> : vector<16x16xf32>
    %27 = tpu.matmul %25, %26, %cst_19 {dimension_numbers = #tpu.dot_dimension_numbers<[1], [1], [0], [0], [0, 0, 1, 0], [], []>} : vector<16x32xf32>, vector<16x32xf32>, vector<16x16xf32> -> vector<16x16xf32>
    %cst_20 = arith.constant 0.000000e+00 : f32
    %28 = vector.broadcast %cst_20 : f32 to vector<16x16xf32>
    %29 = arith.cmpf ogt, %27, %28 : vector<16x16xf32>
    %cst_21 = arith.constant 0.00999999977 : f32
    %30 = vector.broadcast %cst_21 : f32 to vector<16x16xf32>
    %31 = arith.mulf %30, %27 : vector<16x16xf32>
    %32 = arith.select %29, %27, %31 : vector<16x16xi1>, vector<16x16xf32>
    %cst_22 = arith.constant dense<0xFF800000> : vector<16xf32>
    %33 = vector.multi_reduction <maximumf>, %32, %cst_22 [1] : vector<16x16xf32> to vector<16xf32>
    %34 = vector.shape_cast %33 : vector<16xf32> to vector<16x1xf32>
    %35 = vector.broadcast %34 : vector<16x1xf32> to vector<16x16xf32>
    %36 = arith.subf %32, %35 : vector<16x16xf32>
    %37 = math.exp %36 : vector<16x16xf32>
    %cst_23 = arith.constant dense<0.000000e+00> : vector<16xf32>
    %38 = vector.multi_reduction <add>, %37, %cst_23 [1] : vector<16x16xf32> to vector<16xf32>
    %39 = vector.shape_cast %38 : vector<16xf32> to vector<16x1xf32>
    %40 = tpu.reciprocal %39 {approx = true} : vector<16x1xf32> -> vector<16x1xf32>
    %41 = vector.broadcast %40 : vector<16x1xf32> to vector<16x16xf32>
    %42 = arith.mulf %37, %41 : vector<16x16xf32>
    %43 = vector.extract_strided_slice %4 {offsets = [0, 0], sizes = [16, 8], strides = [1, 1]} : vector<32x8xf32> to vector<16x8xf32>
    %cst_24 = arith.constant dense<0.000000e+00> : vector<16x8xf32>
    %44 = tpu.matmul %42, %43, %cst_24 {dimension_numbers = #tpu.dot_dimension_numbers<[1], [0], [0], [1], [0, 0, 1, 1], [], []>} : vector<16x16xf32>, vector<16x8xf32>, vector<16x8xf32> -> vector<16x8xf32>
    %45 = vector.extract_strided_slice %18 {offsets = [16, 0], sizes = [16, 32], strides = [1, 1]} : vector<32x32xf32> to vector<16x32xf32>
    %46 = vector.extract_strided_slice %24 {offsets = [16, 0], sizes = [16, 32], strides = [1, 1]} : vector<32x32xf32> to vector<16x32xf32>
    %cst_25 = arith.constant dense<0.000000e+00> : vector<16x16xf32>
    %47 = tpu.matmul %45, %46, %cst_25 {dimension_numbers = #tpu.dot_dimension_numbers<[1], [1], [0], [0], [0, 0, 1, 0], [], []>} : vector<16x32xf32>, vector<16x32xf32>, vector<16x16xf32> -> vector<16x16xf32>
    %cst_26 = arith.constant 0.000000e+00 : f32
    %48 = vector.broadcast %cst_26 : f32 to vector<16x16xf32>
    %49 = arith.cmpf ogt, %47, %48 : vector<16x16xf32>
    %cst_27 = arith.constant 0.00999999977 : f32
    %50 = vector.broadcast %cst_27 : f32 to vector<16x16xf32>
    %51 = arith.mulf %50, %47 : vector<16x16xf32>
    %52 = arith.select %49, %47, %51 : vector<16x16xi1>, vector<16x16xf32>
    %cst_28 = arith.constant dense<0xFF800000> : vector<16xf32>
    %53 = vector.multi_reduction <maximumf>, %52, %cst_28 [1] : vector<16x16xf32> to vector<16xf32>
    %54 = vector.shape_cast %53 : vector<16xf32> to vector<16x1xf32>
    %55 = vector.broadcast %54 : vector<16x1xf32> to vector<16x16xf32>
    %56 = arith.subf %52, %55 : vector<16x16xf32>
    %57 = math.exp %56 : vector<16x16xf32>
    %cst_29 = arith.constant dense<0.000000e+00> : vector<16xf32>
    %58 = vector.multi_reduction <add>, %57, %cst_29 [1] : vector<16x16xf32> to vector<16xf32>
    %59 = vector.shape_cast %58 : vector<16xf32> to vector<16x1xf32>
    %60 = tpu.reciprocal %59 {approx = true} : vector<16x1xf32> -> vector<16x1xf32>
    %61 = vector.broadcast %60 : vector<16x1xf32> to vector<16x16xf32>
    %62 = arith.mulf %57, %61 : vector<16x16xf32>
    %63 = vector.extract_strided_slice %4 {offsets = [16, 0], sizes = [16, 8], strides = [1, 1]} : vector<32x8xf32> to vector<16x8xf32>
    %cst_30 = arith.constant dense<0.000000e+00> : vector<16x8xf32>
    %64 = tpu.matmul %62, %63, %cst_30 {dimension_numbers = #tpu.dot_dimension_numbers<[1], [0], [0], [1], [0, 0, 1, 1], [], []>} : vector<16x16xf32>, vector<16x8xf32>, vector<16x8xf32> -> vector<16x8xf32>
    %65 = tpu.concatenate %44, %64 in 0 : vector<16x8xf32>, vector<16x8xf32> -> vector<32x8xf32>
    %cst_31 = arith.constant dense<0.000000e+00> : vector<32x64xf32>
    %66 = tpu.matmul %65, %9, %cst_31 {dimension_numbers = #tpu.dot_dimension_numbers<[1], [0], [0], [1], [0, 0, 1, 1], [], []>} : vector<32x8xf32>, vector<8x64xf32>, vector<32x64xf32> -> vector<32x64xf32>
    %67 = vector.extract_strided_slice %13 {offsets = [2, 0], sizes = [1, 64], strides = [1, 1]} : vector<3x64xf32> to vector<1x64xf32>
    %68 = vector.broadcast %67 : vector<1x64xf32> to vector<32x64xf32>
    %69 = arith.addf %66, %68 : vector<32x64xf32>
    %70 = vector.extract_strided_slice %69 {offsets = [0, 0], sizes = [32, 32], strides = [1, 1]} : vector<32x64xf32> to vector<32x32xf32>
    %71 = arith.negf %70 : vector<32x32xf32>
    %72 = math.exp %71 : vector<32x32xf32>
    %cst_32 = arith.constant 1.000000e+00 : f32
    %73 = vector.broadcast %cst_32 : f32 to vector<32x32xf32>
    %74 = arith.addf %73, %72 : vector<32x32xf32>
    %75 = arith.divf %73, %74 : vector<32x32xf32>
    %76 = vector.extract_strided_slice %69 {offsets = [0, 32], sizes = [32, 32], strides = [1, 1]} : vector<32x64xf32> to vector<32x32xf32>
    %77 = arith.negf %76 : vector<32x32xf32>
    %78 = math.exp %77 : vector<32x32xf32>
    %cst_33 = arith.constant 1.000000e+00 : f32
    %79 = vector.broadcast %cst_33 : f32 to vector<32x32xf32>
    %80 = arith.addf %79, %78 : vector<32x32xf32>
    %81 = arith.divf %79, %80 : vector<32x32xf32>
    %82 = arith.mulf %75, %5 : vector<32x32xf32>
    %83 = vector.extract_strided_slice %11 {offsets = [32, 0], sizes = [32, 32], strides = [1, 1]} : vector<64x32xf32> to vector<32x32xf32>
    %cst_34 = arith.constant dense<0.000000e+00> : vector<32x32xf32>
    %84 = tpu.matmul %82, %83, %cst_34 {dimension_numbers = #tpu.dot_dimension_numbers<[1], [0], [0], [1], [0, 0, 1, 1], [], []>} : vector<32x32xf32>, vector<32x32xf32>, vector<32x32xf32> -> vector<32x32xf32>
    %85 = vector.extract_strided_slice %13 {offsets = [1, 32], sizes = [1, 32], strides = [1, 1]} : vector<3x64xf32> to vector<1x32xf32>
    %86 = vector.broadcast %85 : vector<1x32xf32> to vector<32x32xf32>
    %87 = arith.addf %84, %86 : vector<32x32xf32>
    %88 = arith.addf %19, %87 : vector<32x32xf32>
    %89 = math.tanh %88 : vector<32x32xf32>
    %90 = arith.mulf %81, %5 : vector<32x32xf32>
    %cst_35 = arith.constant 1.000000e+00 : f32
    %91 = vector.broadcast %cst_35 : f32 to vector<32x32xf32>
    %92 = arith.subf %91, %81 : vector<32x32xf32>
    %93 = arith.mulf %92, %89 : vector<32x32xf32>
    %94 = arith.addf %90, %93 : vector<32x32xf32>
    %c0_36 = arith.constant 0 : index
    %c0_37 = arith.constant 0 : index
    %95 = vector.load %arg6[%c0_36, %c0_37] : memref<32x32xf32, #tpu.memory_space<vmem>>, vector<32x32xf32>
    tpu.vector_store %arg6[%c0_36, %c0_37], %94 {strides = array<i32>} : memref<32x32xf32, #tpu.memory_space<vmem>>, vector<32x32xf32>,
    %c3_i32 = arith.constant 3 : i32
    %96 = arith.cmpi eq, %arg0, %c3_i32 : i32
    %97 = arith.extui %96 : i1 to i32
    %c0_i32_38 = arith.constant 0 : i32
    %98 = arith.cmpi ne, %97, %c0_i32_38 : i32
    scf.if %98 {
      %c0_39 = arith.constant 0 : index
      %c0_40 = arith.constant 0 : index
      %99 = vector.load %arg5[%c0_39, %c0_40] : memref<32x32xf32, #tpu.memory_space<vmem>>, vector<32x32xf32>
      tpu.vector_store %arg5[%c0_39, %c0_40], %94 {strides = array<i32>} : memref<32x32xf32, #tpu.memory_space<vmem>>, vector<32x32xf32>,
    } else {
    }
    return
  }
  func.func @transform_0(%arg0: i32) -> (i32, i32, i32) {
    %c0_i32 = arith.constant 0 : i32
    %c0_i32_0 = arith.constant 0 : i32
    %c0_i32_1 = arith.constant 0 : i32
    return %arg0, %c0_i32, %c0_i32_0 : i32, i32, i32
  }
  func.func @transform_1(%arg0: i32) -> (i32, i32, i32, i32) {
    %c0_i32 = arith.constant 0 : i32
    %c0_i32_0 = arith.constant 0 : i32
    %c0_i32_1 = arith.constant 0 : i32
    %c0_i32_2 = arith.constant 0 : i32
    return %arg0, %c0_i32, %c0_i32_0, %c0_i32_1 : i32, i32, i32, i32
  }
  func.func @transform_2(%arg0: i32) -> (i32, i32, i32) {
    %c0_i32 = arith.constant 0 : i32
    %c0_i32_0 = arith.constant 0 : i32
    %c0_i32_1 = arith.constant 0 : i32
    return %arg0, %c0_i32, %c0_i32_0 : i32, i32, i32
  }
  func.func @transform_3(%arg0: i32) -> (i32, i32, i32) {
    %c0_i32 = arith.constant 0 : i32
    %c0_i32_0 = arith.constant 0 : i32
    %c0_i32_1 = arith.constant 0 : i32
    return %arg0, %c0_i32, %c0_i32_0 : i32, i32, i32
  }
  func.func @transform_4(%arg0: i32) -> (i32, i32) {
    %c0_i32 = arith.constant 0 : i32
    %c0_i32_0 = arith.constant 0 : i32
    %c0_i32_1 = arith.constant 0 : i32
    return %c0_i32, %c0_i32_0 : i32, i32
  }
}

module attributes {stable_mosaic.version = 11 : i64} {
  func.func @decoder_kernel(%arg0: i32, %arg1: memref<32x32xf32, #tpu.memory_space<vmem>>, %arg2: memref<1x2x8x64xf32, #tpu.memory_space<vmem>>, %arg3: memref<1x64x32xf32, #tpu.memory_space<vmem>>, %arg4: memref<1x3x64xf32, #tpu.memory_space<vmem>>, %arg5: memref<1x32x8xf32, #tpu.memory_space<vmem>>, %arg6: memref<1x1x8xf32, #tpu.memory_space<vmem>>, %arg7: memref<32x24xf32, #tpu.memory_space<vmem>>, %arg8: memref<32x32xf32, #tpu.memory_space<vmem>>, %arg9: memref<32x8xf32, #tpu.memory_space<vmem>>) attributes {dimension_semantics = [#tpu.dimension_semantics<arbitrary>], iteration_bounds = array<i64: 3>, scalar_prefetch = 0 : i64, scratch_operands = 2 : i64, tpu.core_type = #tpu.core_type<tc>, window_params = [{pipeline_mode = #tpu.pipeline_mode<synchronous>, transform_indices = @transform_0, window_bounds = array<i64: 32, 32>}, {transform_indices = @transform_1, window_bounds = array<i64: 1, 2, 8, 64>}, {transform_indices = @transform_2, window_bounds = array<i64: 1, 64, 32>}, {transform_indices = @transform_3, window_bounds = array<i64: 1, 3, 64>}, {transform_indices = @transform_4, window_bounds = array<i64: 1, 32, 8>}, {transform_indices = @transform_5, window_bounds = array<i64: 1, 1, 8>}, {pipeline_mode = #tpu.pipeline_mode<synchronous>, transform_indices = @transform_6, window_bounds = array<i64: 32, 24>}]} {
    %c0_i32 = arith.constant 0 : i32
    %0 = arith.cmpi eq, %arg0, %c0_i32 : i32
    %1 = arith.extui %0 : i1 to i32
    %c0_i32_0 = arith.constant 0 : i32
    %2 = arith.cmpi ne, %1, %c0_i32_0 : i32
    scf.if %2 {
      %c0_50 = arith.constant 0 : index
      %c0_51 = arith.constant 0 : index
      %112 = vector.load %arg1[%c0_50, %c0_51] : memref<32x32xf32, #tpu.memory_space<vmem>>, vector<32x32xf32>
      %c0_52 = arith.constant 0 : index
      %c0_53 = arith.constant 0 : index
      %113 = vector.load %arg8[%c0_52, %c0_53] : memref<32x32xf32, #tpu.memory_space<vmem>>, vector<32x32xf32>
      tpu.vector_store %arg8[%c0_52, %c0_53], %112 {strides = array<i32>} : memref<32x32xf32, #tpu.memory_space<vmem>>, vector<32x32xf32>,
      %cst_54 = arith.constant 0.000000e+00 : f32
      %114 = vector.broadcast %cst_54 : f32 to vector<32x8xf32>
      %c0_55 = arith.constant 0 : index
      %c0_56 = arith.constant 0 : index
      %115 = vector.load %arg9[%c0_55, %c0_56] : memref<32x8xf32, #tpu.memory_space<vmem>>, vector<32x8xf32>
      tpu.vector_store %arg9[%c0_55, %c0_56], %114 {strides = array<i32>} : memref<32x8xf32, #tpu.memory_space<vmem>>, vector<32x8xf32>,
    } else {
    }
    %c0 = arith.constant 0 : index
    %c0_1 = arith.constant 0 : index
    %3 = vector.load %arg9[%c0, %c0_1] : memref<32x8xf32, #tpu.memory_space<vmem>>, vector<32x8xf32>
    %c0_2 = arith.constant 0 : index
    %c0_3 = arith.constant 0 : index
    %4 = vector.load %arg8[%c0_2, %c0_3] : memref<32x32xf32, #tpu.memory_space<vmem>>, vector<32x32xf32>
    %c0_4 = arith.constant 0 : index
    %c0_5 = arith.constant 0 : index
    %c0_6 = arith.constant 0 : index
    %c0_7 = arith.constant 0 : index
    %5 = vector.load %arg2[%c0_4, %c0_5, %c0_6, %c0_7] : memref<1x2x8x64xf32, #tpu.memory_space<vmem>>, vector<1x1x8x64xf32>
    %6 = vector.shape_cast %5 : vector<1x1x8x64xf32> to vector<8x64xf32>
    %c0_8 = arith.constant 0 : index
    %c1 = arith.constant 1 : index
    %c0_9 = arith.constant 0 : index
    %c0_10 = arith.constant 0 : index
    %7 = vector.load %arg2[%c0_8, %c1, %c0_9, %c0_10] : memref<1x2x8x64xf32, #tpu.memory_space<vmem>>, vector<1x1x8x64xf32>
    %8 = vector.shape_cast %7 : vector<1x1x8x64xf32> to vector<8x64xf32>
    %c0_11 = arith.constant 0 : index
    %c0_12 = arith.constant 0 : index
    %c0_13 = arith.constant 0 : index
    %9 = vector.load %arg3[%c0_11, %c0_12, %c0_13] : memref<1x64x32xf32, #tpu.memory_space<vmem>>, vector<1x64x32xf32>
    %10 = vector.shape_cast %9 : vector<1x64x32xf32> to vector<64x32xf32>
    %c0_14 = arith.constant 0 : index
    %c0_15 = arith.constant 0 : index
    %c0_16 = arith.constant 0 : index
    %11 = vector.load %arg4[%c0_14, %c0_15, %c0_16] : memref<1x3x64xf32, #tpu.memory_space<vmem>>, vector<1x3x64xf32>
    %12 = vector.shape_cast %11 : vector<1x3x64xf32> to vector<3x64xf32>
    %cst = arith.constant dense<0.000000e+00> : vector<32x64xf32>
    %13 = tpu.matmul %3, %6, %cst {dimension_numbers = #tpu.dot_dimension_numbers<[1], [0], [0], [1], [0, 0, 1, 1], [], []>} : vector<32x8xf32>, vector<8x64xf32>, vector<32x64xf32> -> vector<32x64xf32>
    %14 = vector.extract_strided_slice %12 {offsets = [0, 0], sizes = [1, 64], strides = [1, 1]} : vector<3x64xf32> to vector<1x64xf32>
    %15 = vector.broadcast %14 : vector<1x64xf32> to vector<32x64xf32>
    %16 = arith.addf %13, %15 : vector<32x64xf32>
    %17 = vector.extract_strided_slice %16 {offsets = [0, 0], sizes = [32, 32], strides = [1, 1]} : vector<32x64xf32> to vector<32x32xf32>
    %18 = vector.extract_strided_slice %16 {offsets = [0, 32], sizes = [32, 32], strides = [1, 1]} : vector<32x64xf32> to vector<32x32xf32>
    %19 = vector.extract_strided_slice %10 {offsets = [0, 0], sizes = [32, 32], strides = [1, 1]} : vector<64x32xf32> to vector<32x32xf32>
    %cst_17 = arith.constant dense<0.000000e+00> : vector<32x32xf32>
    %20 = tpu.matmul %4, %19, %cst_17 {dimension_numbers = #tpu.dot_dimension_numbers<[1], [0], [0], [1], [0, 0, 1, 1], [], []>} : vector<32x32xf32>, vector<32x32xf32>, vector<32x32xf32> -> vector<32x32xf32>
    %21 = vector.extract_strided_slice %12 {offsets = [1, 0], sizes = [1, 32], strides = [1, 1]} : vector<3x64xf32> to vector<1x32xf32>
    %22 = vector.broadcast %21 : vector<1x32xf32> to vector<32x32xf32>
    %23 = arith.addf %20, %22 : vector<32x32xf32>
    %24 = vector.extract_strided_slice %17 {offsets = [0, 0], sizes = [16, 32], strides = [1, 1]} : vector<32x32xf32> to vector<16x32xf32>
    %25 = vector.extract_strided_slice %23 {offsets = [0, 0], sizes = [16, 32], strides = [1, 1]} : vector<32x32xf32> to vector<16x32xf32>
    %cst_18 = arith.constant dense<0.000000e+00> : vector<16x16xf32>
    %26 = tpu.matmul %24, %25, %cst_18 {dimension_numbers = #tpu.dot_dimension_numbers<[1], [1], [0], [0], [0, 0, 1, 0], [], []>} : vector<16x32xf32>, vector<16x32xf32>, vector<16x16xf32> -> vector<16x16xf32>
    %cst_19 = arith.constant 0.000000e+00 : f32
    %27 = vector.broadcast %cst_19 : f32 to vector<16x16xf32>
    %28 = arith.cmpf ogt, %26, %27 : vector<16x16xf32>
    %cst_20 = arith.constant 0.00999999977 : f32
    %29 = vector.broadcast %cst_20 : f32 to vector<16x16xf32>
    %30 = arith.mulf %29, %26 : vector<16x16xf32>
    %31 = arith.select %28, %26, %30 : vector<16x16xi1>, vector<16x16xf32>
    %cst_21 = arith.constant dense<0xFF800000> : vector<16xf32>
    %32 = vector.multi_reduction <maximumf>, %31, %cst_21 [1] : vector<16x16xf32> to vector<16xf32>
    %33 = vector.shape_cast %32 : vector<16xf32> to vector<16x1xf32>
    %34 = vector.broadcast %33 : vector<16x1xf32> to vector<16x16xf32>
    %35 = arith.subf %31, %34 : vector<16x16xf32>
    %36 = math.exp %35 : vector<16x16xf32>
    %cst_22 = arith.constant dense<0.000000e+00> : vector<16xf32>
    %37 = vector.multi_reduction <add>, %36, %cst_22 [1] : vector<16x16xf32> to vector<16xf32>
    %38 = vector.shape_cast %37 : vector<16xf32> to vector<16x1xf32>
    %39 = tpu.reciprocal %38 {approx = true} : vector<16x1xf32> -> vector<16x1xf32>
    %40 = vector.broadcast %39 : vector<16x1xf32> to vector<16x16xf32>
    %41 = arith.mulf %36, %40 : vector<16x16xf32>
    %42 = vector.extract_strided_slice %3 {offsets = [0, 0], sizes = [16, 8], strides = [1, 1]} : vector<32x8xf32> to vector<16x8xf32>
    %cst_23 = arith.constant dense<0.000000e+00> : vector<16x8xf32>
    %43 = tpu.matmul %41, %42, %cst_23 {dimension_numbers = #tpu.dot_dimension_numbers<[1], [0], [0], [1], [0, 0, 1, 1], [], []>} : vector<16x16xf32>, vector<16x8xf32>, vector<16x8xf32> -> vector<16x8xf32>
    %44 = vector.extract_strided_slice %17 {offsets = [16, 0], sizes = [16, 32], strides = [1, 1]} : vector<32x32xf32> to vector<16x32xf32>
    %45 = vector.extract_strided_slice %23 {offsets = [16, 0], sizes = [16, 32], strides = [1, 1]} : vector<32x32xf32> to vector<16x32xf32>
    %cst_24 = arith.constant dense<0.000000e+00> : vector<16x16xf32>
    %46 = tpu.matmul %44, %45, %cst_24 {dimension_numbers = #tpu.dot_dimension_numbers<[1], [1], [0], [0], [0, 0, 1, 0], [], []>} : vector<16x32xf32>, vector<16x32xf32>, vector<16x16xf32> -> vector<16x16xf32>
    %cst_25 = arith.constant 0.000000e+00 : f32
    %47 = vector.broadcast %cst_25 : f32 to vector<16x16xf32>
    %48 = arith.cmpf ogt, %46, %47 : vector<16x16xf32>
    %cst_26 = arith.constant 0.00999999977 : f32
    %49 = vector.broadcast %cst_26 : f32 to vector<16x16xf32>
    %50 = arith.mulf %49, %46 : vector<16x16xf32>
    %51 = arith.select %48, %46, %50 : vector<16x16xi1>, vector<16x16xf32>
    %cst_27 = arith.constant dense<0xFF800000> : vector<16xf32>
    %52 = vector.multi_reduction <maximumf>, %51, %cst_27 [1] : vector<16x16xf32> to vector<16xf32>
    %53 = vector.shape_cast %52 : vector<16xf32> to vector<16x1xf32>
    %54 = vector.broadcast %53 : vector<16x1xf32> to vector<16x16xf32>
    %55 = arith.subf %51, %54 : vector<16x16xf32>
    %56 = math.exp %55 : vector<16x16xf32>
    %cst_28 = arith.constant dense<0.000000e+00> : vector<16xf32>
    %57 = vector.multi_reduction <add>, %56, %cst_28 [1] : vector<16x16xf32> to vector<16xf32>
    %58 = vector.shape_cast %57 : vector<16xf32> to vector<16x1xf32>
    %59 = tpu.reciprocal %58 {approx = true} : vector<16x1xf32> -> vector<16x1xf32>
    %60 = vector.broadcast %59 : vector<16x1xf32> to vector<16x16xf32>
    %61 = arith.mulf %56, %60 : vector<16x16xf32>
    %62 = vector.extract_strided_slice %3 {offsets = [16, 0], sizes = [16, 8], strides = [1, 1]} : vector<32x8xf32> to vector<16x8xf32>
    %cst_29 = arith.constant dense<0.000000e+00> : vector<16x8xf32>
    %63 = tpu.matmul %61, %62, %cst_29 {dimension_numbers = #tpu.dot_dimension_numbers<[1], [0], [0], [1], [0, 0, 1, 1], [], []>} : vector<16x16xf32>, vector<16x8xf32>, vector<16x8xf32> -> vector<16x8xf32>
    %64 = tpu.concatenate %43, %63 in 0 : vector<16x8xf32>, vector<16x8xf32> -> vector<32x8xf32>
    %cst_30 = arith.constant dense<0.000000e+00> : vector<32x64xf32>
    %65 = tpu.matmul %64, %8, %cst_30 {dimension_numbers = #tpu.dot_dimension_numbers<[1], [0], [0], [1], [0, 0, 1, 1], [], []>} : vector<32x8xf32>, vector<8x64xf32>, vector<32x64xf32> -> vector<32x64xf32>
    %66 = vector.extract_strided_slice %12 {offsets = [2, 0], sizes = [1, 64], strides = [1, 1]} : vector<3x64xf32> to vector<1x64xf32>
    %67 = vector.broadcast %66 : vector<1x64xf32> to vector<32x64xf32>
    %68 = arith.addf %65, %67 : vector<32x64xf32>
    %69 = vector.extract_strided_slice %68 {offsets = [0, 0], sizes = [32, 32], strides = [1, 1]} : vector<32x64xf32> to vector<32x32xf32>
    %70 = arith.negf %69 : vector<32x32xf32>
    %71 = math.exp %70 : vector<32x32xf32>
    %cst_31 = arith.constant 1.000000e+00 : f32
    %72 = vector.broadcast %cst_31 : f32 to vector<32x32xf32>
    %73 = arith.addf %72, %71 : vector<32x32xf32>
    %74 = arith.divf %72, %73 : vector<32x32xf32>
    %75 = vector.extract_strided_slice %68 {offsets = [0, 32], sizes = [32, 32], strides = [1, 1]} : vector<32x64xf32> to vector<32x32xf32>
    %76 = arith.negf %75 : vector<32x32xf32>
    %77 = math.exp %76 : vector<32x32xf32>
    %cst_32 = arith.constant 1.000000e+00 : f32
    %78 = vector.broadcast %cst_32 : f32 to vector<32x32xf32>
    %79 = arith.addf %78, %77 : vector<32x32xf32>
    %80 = arith.divf %78, %79 : vector<32x32xf32>
    %81 = arith.mulf %74, %4 : vector<32x32xf32>
    %82 = vector.extract_strided_slice %10 {offsets = [32, 0], sizes = [32, 32], strides = [1, 1]} : vector<64x32xf32> to vector<32x32xf32>
    %cst_33 = arith.constant dense<0.000000e+00> : vector<32x32xf32>
    %83 = tpu.matmul %81, %82, %cst_33 {dimension_numbers = #tpu.dot_dimension_numbers<[1], [0], [0], [1], [0, 0, 1, 1], [], []>} : vector<32x32xf32>, vector<32x32xf32>, vector<32x32xf32> -> vector<32x32xf32>
    %84 = vector.extract_strided_slice %12 {offsets = [1, 32], sizes = [1, 32], strides = [1, 1]} : vector<3x64xf32> to vector<1x32xf32>
    %85 = vector.broadcast %84 : vector<1x32xf32> to vector<32x32xf32>
    %86 = arith.addf %83, %85 : vector<32x32xf32>
    %87 = arith.addf %18, %86 : vector<32x32xf32>
    %88 = math.tanh %87 : vector<32x32xf32>
    %89 = arith.mulf %80, %4 : vector<32x32xf32>
    %cst_34 = arith.constant 1.000000e+00 : f32
    %90 = vector.broadcast %cst_34 : f32 to vector<32x32xf32>
    %91 = arith.subf %90, %80 : vector<32x32xf32>
    %92 = arith.mulf %91, %88 : vector<32x32xf32>
    %93 = arith.addf %89, %92 : vector<32x32xf32>
    %c0_35 = arith.constant 0 : index
    %c0_36 = arith.constant 0 : index
    %c0_37 = arith.constant 0 : index
    %94 = vector.load %arg5[%c0_35, %c0_36, %c0_37] : memref<1x32x8xf32, #tpu.memory_space<vmem>>, vector<1x32x8xf32>
    %95 = vector.shape_cast %94 : vector<1x32x8xf32> to vector<32x8xf32>
    %cst_38 = arith.constant dense<0.000000e+00> : vector<32x8xf32>
    %96 = tpu.matmul %93, %95, %cst_38 {dimension_numbers = #tpu.dot_dimension_numbers<[1], [0], [0], [1], [0, 0, 1, 1], [], []>} : vector<32x32xf32>, vector<32x8xf32>, vector<32x8xf32> -> vector<32x8xf32>
    %c0_39 = arith.constant 0 : index
    %c0_40 = arith.constant 0 : index
    %c0_41 = arith.constant 0 : index
    %97 = vector.load %arg6[%c0_39, %c0_40, %c0_41] : memref<1x1x8xf32, #tpu.memory_space<vmem>>, vector<1x1x8xf32>
    %98 = vector.shape_cast %97 : vector<1x1x8xf32> to vector<1x8xf32>
    %99 = vector.broadcast %98 : vector<1x8xf32> to vector<32x8xf32>
    %100 = arith.addf %96, %99 : vector<32x8xf32>
    %c0_42 = arith.constant 0 : index
    %c0_43 = arith.constant 0 : index
    %101 = vector.load %arg8[%c0_42, %c0_43] : memref<32x32xf32, #tpu.memory_space<vmem>>, vector<32x32xf32>
    tpu.vector_store %arg8[%c0_42, %c0_43], %93 {strides = array<i32>} : memref<32x32xf32, #tpu.memory_space<vmem>>, vector<32x32xf32>,
    %c0_44 = arith.constant 0 : index
    %c0_45 = arith.constant 0 : index
    %102 = vector.load %arg9[%c0_44, %c0_45] : memref<32x8xf32, #tpu.memory_space<vmem>>, vector<32x8xf32>
    tpu.vector_store %arg9[%c0_44, %c0_45], %100 {strides = array<i32>} : memref<32x8xf32, #tpu.memory_space<vmem>>, vector<32x8xf32>,
    %c0_i32_46 = arith.constant 0 : i32
    %103 = arith.cmpi eq, %arg0, %c0_i32_46 : i32
    %104 = arith.extui %103 : i1 to i32
    %c0_i32_47 = arith.constant 0 : i32
    %105 = arith.cmpi ne, %104, %c0_i32_47 : i32
    scf.if %105 {
      %c0_50 = arith.constant 0 : index
      %c0_51 = arith.constant 0 : index
      %112 = vector.load %arg7[%c0_50, %c0_51] : memref<32x24xf32, #tpu.memory_space<vmem>>, vector<32x8xf32>
      tpu.vector_store %arg7[%c0_50, %c0_51], %100 {strides = array<i32>} : memref<32x24xf32, #tpu.memory_space<vmem>>, vector<32x8xf32>,
    } else {
    }
    %c1_i32 = arith.constant 1 : i32
    %106 = arith.cmpi eq, %arg0, %c1_i32 : i32
    %107 = arith.extui %106 : i1 to i32
    %c0_i32_48 = arith.constant 0 : i32
    %108 = arith.cmpi ne, %107, %c0_i32_48 : i32
    scf.if %108 {
      %c0_50 = arith.constant 0 : index
      %c8 = arith.constant 8 : index
      %112 = vector.load %arg7[%c0_50, %c8] : memref<32x24xf32, #tpu.memory_space<vmem>>, vector<32x8xf32>
      tpu.vector_store %arg7[%c0_50, %c8], %100 {strides = array<i32>} : memref<32x24xf32, #tpu.memory_space<vmem>>, vector<32x8xf32>,
    } else {
    }
    %c2_i32 = arith.constant 2 : i32
    %109 = arith.cmpi eq, %arg0, %c2_i32 : i32
    %110 = arith.extui %109 : i1 to i32
    %c0_i32_49 = arith.constant 0 : i32
    %111 = arith.cmpi ne, %110, %c0_i32_49 : i32
    scf.if %111 {
      %c0_50 = arith.constant 0 : index
      %c16 = arith.constant 16 : index
      %112 = vector.load %arg7[%c0_50, %c16] : memref<32x24xf32, #tpu.memory_space<vmem>>, vector<32x8xf32>
      tpu.vector_store %arg7[%c0_50, %c16], %100 {strides = array<i32>} : memref<32x24xf32, #tpu.memory_space<vmem>>, vector<32x8xf32>,
    } else {
    }
    return
  }
  func.func @transform_0(%arg0: i32) -> (i32, i32) {
    %c0_i32 = arith.constant 0 : i32
    %c0_i32_0 = arith.constant 0 : i32
    %c0_i32_1 = arith.constant 0 : i32
    return %c0_i32, %c0_i32_0 : i32, i32
  }
  func.func @transform_1(%arg0: i32) -> (i32, i32, i32, i32) {
    %c0_i32 = arith.constant 0 : i32
    %c0_i32_0 = arith.constant 0 : i32
    %c0_i32_1 = arith.constant 0 : i32
    %c0_i32_2 = arith.constant 0 : i32
    return %arg0, %c0_i32, %c0_i32_0, %c0_i32_1 : i32, i32, i32, i32
  }
  func.func @transform_2(%arg0: i32) -> (i32, i32, i32) {
    %c0_i32 = arith.constant 0 : i32
    %c0_i32_0 = arith.constant 0 : i32
    %c0_i32_1 = arith.constant 0 : i32
    return %arg0, %c0_i32, %c0_i32_0 : i32, i32, i32
  }
  func.func @transform_3(%arg0: i32) -> (i32, i32, i32) {
    %c0_i32 = arith.constant 0 : i32
    %c0_i32_0 = arith.constant 0 : i32
    %c0_i32_1 = arith.constant 0 : i32
    return %arg0, %c0_i32, %c0_i32_0 : i32, i32, i32
  }
  func.func @transform_4(%arg0: i32) -> (i32, i32, i32) {
    %c0_i32 = arith.constant 0 : i32
    %c0_i32_0 = arith.constant 0 : i32
    %c0_i32_1 = arith.constant 0 : i32
    return %arg0, %c0_i32, %c0_i32_0 : i32, i32, i32
  }
  func.func @transform_5(%arg0: i32) -> (i32, i32, i32) {
    %c0_i32 = arith.constant 0 : i32
    %c0_i32_0 = arith.constant 0 : i32
    %c0_i32_1 = arith.constant 0 : i32
    return %arg0, %c0_i32, %c0_i32_0 : i32, i32, i32
  }
  func.func @transform_6(%arg0: i32) -> (i32, i32) {
    %c0_i32 = arith.constant 0 : i32
    %c0_i32_0 = arith.constant 0 : i32
    %c0_i32_1 = arith.constant 0 : i32
    return %c0_i32, %c0_i32_0 : i32, i32
  }
}

</mosaic_0001>

<bundles_post_ra>
// kernel: abcgru_forward.2
= control target key start
LH: loop header
LB: loop body
LE: loop exit
PB: predicated region body
PF: predicated region fallthrough
CT: control target
= control target key end

     0   :  { %s992_s15 = smov 0   ;;  %s1170_s0 = inlined_call_operand.vmem [shape: f32[4,32,8], index: 0, kind: input, shape index: {}]   ;;  %s1171_s1 = inlined_call_operand.vmem [shape: f32[4,2,8,64], index: 1, kind: input, shape index: {}]   ;;  %s1172_s2 = inlined_call_operand.vmem [shape: f32[4,64,32], index: 2, kind: input, shape index: {}]   ;;  %s1173_s3 = inlined_call_operand.vmem [shape: f32[4,3,64], index: 3, kind: input, shape index: {}]   ;;  %s1174_s4 = inlined_call_operand.vmem [shape: f32[32,32], index: 4, kind: output, shape index: {}]  }
   0x1 LB: > { %s998_s16 = sadd.s32 4294967295, %s962_s15   ;;  %p854_p0 = scmp.ge.s32.totalorder %s962_s15, 1  ;;  %s962_s15 = sphi %s992_s15, %s14_s15  }
   0x2   : > { %p186_p1 = scmp.lt.s32.totalorder %s962_s15, 5 }
   0x4   : > { %p187_p2 = pnand %p854_p0, %p186_p1 }
   0x5   : > { %p221_p3 = scmp.lt.s32.totalorder (!%p187_p2), %s998_s16, 3  ;;  %p862_p4 = scmp.ne.s32.totalorder (!%p187_p2), %s998_s16, 0 }
   0x6   : > { %190 = sbr.rel (%p187_p2) target bundleno = 1258 (0x4ea), region = 36 }
   0xb   : > { %s222_s17 = scalar_select %p221_p3, %s998_s16, 3 }
   0xc   : > { %243 = sbr.rel (%p862_p4) target bundleno = 22 (0x16), region = 40 }
   0xd   : > { %s899_s18 = sshll.u32 %s222_s17, 5  ;;  %s900_s19 = sshll.u32 %s222_s17, 4 }
   0xe   : > { %s1007_s22 = scalar_lea.vmem %s1170_s0, %s899_s18  ;;  %s1012_s25 = scalar_lea.vmem %s1171_s1, %s900_s19 }
   0xf   : > { %s901_s26 = sshll.u32 %s222_s17, 6  ;;  %s861_s27 = sshll.u32 %s222_s17, 2 }
  0x10   : > { %s1017_s30 = scalar_lea.vmem %s1172_s2, %s901_s26  ;;  %s1022_s7 = scalar_lea.vmem %s1173_s3, %s861_s27 }
  0x11   : > { %vm244_vm0 = vcmask 261120   ;;  %v964_v0 = vmov 0.0  }
  0x12   : > { %245 = vst.msk [vmem:[#allocation2] sm:$0xff] %vm244_vm0, %v964_v0 }
  0x13   : > { %246 = vst.msk [vmem:[#allocation2 + $0x8] sm:$0xff] %vm244_vm0, %v964_v0 }
  0x14   : > { %247 = vst.msk [vmem:[#allocation2 + $0x10] sm:$0xff] %vm244_vm0, %v964_v0 }
  0x15   : > { %248 = vst.msk [vmem:[#allocation2 + $0x18] sm:$0xff] %vm244_vm0, %v964_v0 }
  0x16 PF: > { %v263_v1 = vld [vmem:[%s1017_s30 + $0x18] sm:$0xff]  ;;  %v262_v2 = vld [vmem:[%s1017_s30 + $0x10] sm:$0xff]  ;;  %v261_v3 = vld [vmem:[%s1017_s30 + $0x8] sm:$0xff]  ;;  %vm270_vm1 = vcmask 64512   ;;  %vm313_vm2 = vcmask 261120   ;;  %vm396_vm4 = vcmask 130048  }
  0x17   : > { %338 = vmatpush.msra.mxu1 %v263_v1  ;;  %v257_v4 = vld [vmem:[%s1012_s25] sm:$0xff]  ;;  %v250_v5 = vld [vmem:[%s1007_s22 + $0x8] sm:$0xff]  ;;  %v251_v9 = vld [vmem:[%s1007_s22 + $0x10] sm:$0xff]  ;;  %s965_s8 = smov 96   ;;  %s966_s9 = smov 32  }
  0x18   : > { %v249_v6 = vld [vmem:[%s1007_s22] sm:$0xff]  ;;  %902 = vmatpush.msra.mxu2 %v257_v4  ;;  %298 = vmatpush.msra.mxu0 %v257_v4  ;;  %v252_v11 = vld [vmem:[%s1007_s22 + $0x18] sm:$0xff]  ;;  %p896_p5 = scmp.ne.s32.totalorder %s998_s16, 3 }
  0x19   : > { %339 = vmatpush.msra.mxu1 %v262_v2  ;;  %v260_v7 = vld [vmem:[%s1017_s30] sm:$0xff]  ;;  %865 = vmatmul.msk.f32.vlgmr.msra.gmra.mxu2 %vm270_vm1, %v250_v5 }
  0x1a   : > { %v1033_v8 = vld [vmem:[#allocation2] sm:$0xff]  ;;  %864 = vmatmul.msk.f32.vlgmr.msra.gmra.mxu0 %vm270_vm1, %v249_v6  ;;  %v1040_v10 = vld [vmem:[#allocation2 + $0x8] sm:$0xff] }
  0x1b   : > { %340 = vmatpush.msra.mxu1 %v261_v3  ;;  %v1046_v12 = vld [vmem:[#allocation2 + $0x10] sm:$0xff]  ;;  %v1055_v15 = vld [vmem:[%s1022_s7] sm:$0x7] }
  0x1c   : > { %v1050_v13 = vld [vmem:[#allocation2 + $0x18] sm:$0xff]  ;;  %v1058_v16 = vperm.slane %v1055_v15, 1  ;;  %v269_v19 = vperm.slane %v1055_v15, 0 }
  0x1d   : > { %341 = vmatpush.msra.mxu1 %v260_v7 }
  0x1e   : > { %868 = vmatmul.msk.f32.vlgmr.msra.gmra.mxu1 %vm313_vm2, %v1033_v8 }
  0x1f   : > { %439 = vmatpush.msrb.mxu1 %v250_v5 }
  0x21   : > { %440 = vmatpush.msrb.mxu1 %v249_v6  ;;  %866 = vmatmul.msk.f32.gmra.mxu2 %vm270_vm1, %v251_v9 }
  0x26   : > { %869 = vmatmul.msk.f32.gmra.mxu1 %vm313_vm2, %v1040_v10 }
  0x29   : > { %867 = vmatmul.msk.f32.gmra.mxu2 %vm270_vm1, %v252_v11 }
  0x2e   : > { %870 = vmatmul.msk.f32.gmra.mxu1 %vm313_vm2, %v1046_v12 }
  0x36   : > { %871 = vmatmul.msk.f32.gmra.mxu1 %vm313_vm2, %v1050_v13 }
  0x97   : > { %v300_v20 = vpop.f32.mrf.mxu0 }
  0x98   : > { %v1065_v23 = vadd.f32 %v300_v20, %v269_v19 }
  0x9b   : > { %v343_v14 = vpop.f32.mrf.mxu1 }
  0x9c   : > { %v303_v21 = vpop.f32.mrf.mxu2  ;;  %v344_v22 = vadd.f32 %v343_v14, %v1058_v16 }
  0x9d   : > { %v1067_v24 = vadd.f32 %v303_v21, %v269_v19 }
  0xa3   : > { %v346_v17 = vpop.f32.mrf.mxu1 }
  0xa4   : > { %v347_v18 = vadd.f32 %v346_v17, %v1058_v16  ;;  %v306_v28 = vpop.f32.mrf.mxu2 }
  0xa5   : > { %v1078_v30 = vadd.f32 %v306_v28, %v269_v19 }
  0xa6   : > { %872 = vmatpush.xpose.msk.msrb.mxu0 %vm313_vm2, %v347_v18  ;;  %903 = vmatpush.xpose.msk.msrb.mxu2 %vm313_vm2, %v347_v18 }
  0xaa   : > { %873 = vmatpush.xpose.msk.msrb.mxu0 %vm313_vm2, %v344_v22  ;;  %904 = vmatpush.xpose.msk.msrb.mxu2 %vm313_vm2, %v344_v22 }
  0xab   : > { %v349_v25 = vpop.f32.mrf.mxu1 }
  0xac   : > { %v350_v29 = vadd.f32 %v349_v25, %v1058_v16  ;;  %v309_v31 = vpop.f32.mrf.mxu2  ;;  %v863_v25 = vld [vmem:[%s1012_s25 + $0x8] sm:$0xff] }
  0xad   : > { %874 = vmatmul.msk.f32.vlgmr.msrb.gmra.mxu0 %vm313_vm2, %v1065_v23  ;;  %875 = vmatmul.msk.f32.vlgmr.msrb.gmra.mxu2 %vm313_vm2, %v1067_v24  ;;  %v1083_v32 = vadd.f32 %v309_v31, %v269_v19  ;;  %v267_v31 = vld [vmem:[%s1017_s30 + $0x38] sm:$0xff] }
  0xae   : > { %531 = vmatpush.msra.mxu2 %v252_v11  ;;  %568 = vmatpush.msra.mxu0 %v863_v25 }
  0xb0   : > { %532 = vmatpush.msra.mxu2 %v251_v9 }
  0xb3   : > { %v352_v26 = vpop.f32.mrf.mxu1 }
  0xb4   : > { %v353_v27 = vadd.f32 %v352_v26, %v1058_v16 }
  0xb6   : > { %878 = vmatpush.xpose.msk.msra.mxu3 %vm313_vm2, %v353_v27 }
  0xba   : > { %879 = vmatpush.xpose.msk.msra.mxu3 %vm313_vm2, %v350_v29 }
  0xbd   : > { %880 = vmatmul.msk.f32.vlgmr.msra.gmra.mxu3 %vm313_vm2, %v1078_v30 }
  0xbe   : > { %690 = vmatpush.msrb.mxu3 %v267_v31 }
  0xc5   : > { %881 = vmatmul.msk.f32.gmra.mxu3 %vm313_vm2, %v1083_v32 }
 0x12a   : > { %v384_v33 = vpop.f32.mrf.mxu0 }
 0x12b   : > { %v392_v34 = vmul.f32 0.01, %v384_v33  ;;  %vm390_vm3 = vcmp.gt.f32.partialorder %v384_v33, 0.0 }
 0x12d   : > { %v394_v35 = vsel %vm390_vm3, %v384_v33, %v392_v34  ;;  %v266_v33 = vld [vmem:[%s1017_s30 + $0x30] sm:$0xff]  ;;  %v540_v34 = vperm.slane %v1055_v15, 2 }
 0x12e   : > { %v397_v36 = vsel %vm396_vm4, %v394_v35, -inf  ;;  %691 = vmatpush.msrb.mxu3 %v266_v33 }
 0x12f   : > { %398 = vmax.xlane.f32.xlu0 %v397_v36  ;;  %v264_v36 = vld [vmem:[%s1017_s30 + $0x20] sm:$0xff] }
 0x130   : > { %v387_v37 = vpop.f32.mrf.mxu2 }
 0x131   : > { %vm391_vm5 = vcmp.gt.f32.partialorder %v387_v37, 0.0  ;;  %v393_v38 = vmul.f32 0.01, %v387_v37 }
 0x133   : > { %v395_v39 = vsel %vm391_vm5, %v387_v37, %v393_v38 }
 0x134   : > { %v400_v40 = vsel %vm396_vm4, %v395_v39, -inf }
 0x137   : > { %401 = vmax.xlane.f32.xlu0 %v400_v40 }
 0x140   : > { %v477_v41 = vpop.f32.mrf.mxu3 }
 0x141   : > { %v485_v42 = vmul.f32 0.01, %v477_v41  ;;  %vm483_vm6 = vcmp.gt.f32.partialorder %v477_v41, 0.0 }
 0x143   : > { %v487_v43 = vsel %vm483_vm6, %v477_v41, %v485_v42 }
 0x144   : > { %v489_v44 = vsel %vm396_vm4, %v487_v43, -inf }
 0x145   : > { %490 = vmax.xlane.f32.xlu1 %v489_v44 }
 0x148   : > { %v480_v45 = vpop.f32.mrf.mxu3 }
 0x149   : > { %vm484_vm7 = vcmp.gt.f32.partialorder %v480_v45, 0.0  ;;  %v486_v46 = vmul.f32 0.01, %v480_v45 }
 0x14b   : > { %v488_v47 = vsel %vm484_vm7, %v480_v45, %v486_v46 }
 0x14c   : > { %v492_v48 = vsel %vm396_vm4, %v488_v47, -inf }
 0x14d   : > { %493 = vmax.xlane.f32.xlu1 %v492_v48 }
 0x1a2   : > { %v399_v49 = vpop.xlane.xlu0 %398 }
 0x1a3   : > { %v403_v50 = vsub.f32 %v394_v35, %v399_v49  ;;  %v265_v35 = vld [vmem:[%s1017_s30 + $0x28] sm:$0xff] }
 0x1a4   : > { %692 = vmatpush.msrb.mxu3 %v265_v35 }
 0x1a5   : > { %v405_v51 = vmul.f32 1.442695, %v403_v50 }
 0x1a6   : > { %693 = vmatpush.msrb.mxu3 %v264_v36 }
 0x1a7   : > { %916 = vpow2.f32 %v405_v51 }
 0x1aa   : > { %v402_v52 = vpop.xlane.xlu0 %401 }
 0x1ab   : > { %v404_v53 = vsub.f32 %v395_v39, %v402_v52 }
 0x1ad   : > { %v917_v54 = vpop.eup %916  ;;  %v407_v55 = vmul.f32 1.442695, %v404_v53 }
 0x1ae   : > { %v409_v56 = vsel %vm396_vm4, %v917_v54, 0.0 }
 0x1af   : > { %918 = vpow2.f32 %v407_v55  ;;  %410 = vadd.xlane.f32.xlu2 %v409_v56 }
 0x1b5   : > { %v919_v57 = vpop.eup %918 }
 0x1b6   : > { %v412_v58 = vsel %vm396_vm4, %v919_v57, 0.0 }
 0x1b7   : > { %413 = vadd.xlane.f32.xlu2 %v412_v58 }
 0x1b8   : > { %v491_v59 = vpop.xlane.xlu1 %490 }
 0x1b9   : > { %v495_v60 = vsub.f32 %v487_v43, %v491_v59 }
 0x1bb   : > { %v497_v61 = vmul.f32 1.442695, %v495_v60 }
 0x1bd   : > { %920 = vpow2.f32 %v497_v61 }
 0x1c0   : > { %v494_v62 = vpop.xlane.xlu1 %493 }
 0x1c1   : > { %v496_v63 = vsub.f32 %v488_v47, %v494_v62 }
 0x1c3   : > { %v921_v0 = vpop.eup %920  ;;  %v499_v1 = vmul.f32 1.442695, %v496_v63 }
 0x1c4   : > { %v501_v2 = vsel %vm396_vm4, %v921_v0, 0.0 }
 0x1c5   : > { %922 = vpow2.f32 %v499_v1  ;;  %502 = vadd.xlane.f32.xlu0 %v501_v2 }
 0x1cb   : > { %v923_v3 = vpop.eup %922 }
 0x1cc   : > { %v504_v4 = vsel %vm396_vm4, %v923_v3, 0.0 }
 0x1cd   : > { %505 = vadd.xlane.f32.xlu1 %v504_v4 }
 0x1cf   : > { %663 = vrot.lane.b32.xlu2 %v1058_v16, %s965_s8 }
 0x222   : > { %v411_v5 = vpop.xlane.xlu2 %410 }
 0x223   : > { %924 = vrcp.f32 %v411_v5 }
 0x229   : > { %v925_v6 = vpop.eup %924 }
 0x22a   : > { %v414_v7 = vpop.xlane.xlu2 %413  ;;  %v417_v9 = vmul.f32 %v925_v6, %v917_v54 }
 0x22b   : > { %926 = vrcp.f32 %v414_v7 }
 0x22c   : > { %876 = vmatmul.msk.f32.vlgmr.msrb.gmra.mxu1 %vm396_vm4, %v417_v9 }
 0x231   : > { %v927_v11 = vpop.eup %926 }
 0x232   : > { %v418_v14 = vmul.f32 %v927_v11, %v919_v57 }
 0x234   : > { %877 = vmatmul.msk.f32.gmra.mxu1 %vm396_vm4, %v418_v14 }
 0x238   : > { %v503_v17 = vpop.xlane.xlu0 %502 }
 0x239   : > { %928 = vrcp.f32 %v503_v17 }
 0x23f   : > { %v929_v18 = vpop.eup %928 }
 0x240   : > { %v509_v19 = vmul.f32 %v929_v18, %v921_v0  ;;  %v506_v20 = vpop.xlane.xlu1 %505 }
 0x241   : > { %930 = vrcp.f32 %v506_v20 }
 0x242   : > { %882 = vmatmul.msk.f32.vlgmr.msra.gmra.mxu2 %vm396_vm4, %v509_v19 }
 0x247   : > { %v931_v21 = vpop.eup %930 }
 0x248   : > { %v510_v22 = vmul.f32 %v931_v21, %v923_v3 }
 0x24a   : > { %883 = vmatmul.msk.f32.gmra.mxu2 %vm396_vm4, %v510_v22 }
 0x2a9   : > { %v442_v26 = vpop.f32.mrf.mxu1 }
 0x2aa   : > { %884 = vmatmul.msk.f32.vlgmr.msra.gmra.mxu0 %vm270_vm1, %v442_v26 }
 0x2b1   : > { %v445_v27 = vpop.f32.mrf.mxu1 }
 0x2b2   : > { %885 = vmatmul.msk.f32.gmra.mxu0 %vm270_vm1, %v445_v27 }
 0x2c5   : > { %v534_v28 = vpop.f32.mrf.mxu2 }
 0x2c6   : > { %886 = vmatmul.msk.f32.gmra.mxu0 %vm270_vm1, %v534_v28 }
 0x2cd   : > { %v537_v29 = vpop.f32.mrf.mxu2 }
 0x2ce   : > { %887 = vmatmul.msk.f32.gmra.mxu0 %vm270_vm1, %v537_v29 }
 0x327   : > { %v570_v37 = vpop.f32.mrf.mxu0 }
 0x328   : > { %v571_v38 = vadd.f32 %v570_v37, %v540_v34 }
 0x32a   : > { %v888_v39 = vmul.f32 -1.442695, %v571_v38 }
 0x32c   : > { %932 = vpow2.f32 %v888_v39 }
 0x32f   : > { %v573_v40 = vpop.f32.mrf.mxu0 }
 0x330   : > { %v574_v41 = vadd.f32 %v573_v40, %v540_v34 }
 0x332   : > { %v933_v42 = vpop.eup %932  ;;  %v889_v43 = vmul.f32 -1.442695, %v574_v41 }
 0x333   : > { %v594_v44 = vadd.f32 1.0, %v933_v42 }
 0x334   : > { %934 = vpow2.f32 %v889_v43 }
 0x335   : > { %936 = vrcp.f32 %v594_v44  ;;  %v609_v48 = vand.u32 2147483648, %v594_v44  ;;  %v607_v50 = vand.u32 2147483647, %v594_v44  ;;  %vm603_vm9 = vweird.f32 %v594_v44 }
 0x337   : > { %v610_v54 = vor.u32 1.1754944e-38, %v609_v48  ;;  %vm608_vm11 = vcmp.eq.f32.partialorder %v607_v50, 8.507059e+37 }
 0x33a   : > { %v935_v16 = vpop.eup %934 }
 0x33b   : > { %v937_v45 = vpop.eup %936  ;;  %v595_v46 = vadd.f32 1.0, %v935_v16  ;;  %v664_v16 = vpop.permute.xlu2 %663 }
 0x33c   : > { %v599_v47 = vmul.f32 %v937_v45, %v594_v44  ;;  %vm604_vm8 = vweird.f32 %v937_v45 }
 0x33d   : > { %938 = vrcp.f32 %v595_v46  ;;  %vm605_vm10 = vmor %vm603_vm9, %vm604_vm8  ;;  %v624_v62 = vand.u32 2147483648, %v595_v46  ;;  %v622_v0 = vand.u32 2147483647, %v595_v46  ;;  %vm618_vm13 = vweird.f32 %v595_v46 }
 0x33e   : > { %v600_v15 = vsub.f32 1.0, %v599_v47 }
 0x33f   : > { %v625_v3 = vor.u32 1.1754944e-38, %v624_v62  ;;  %vm623_vm15 = vcmp.eq.f32.partialorder %v622_v0, 8.507059e+37 }
 0x340   : > { %v601_v49 = vmul.f32 %v937_v45, %v600_v15 }
 0x342   : > { %v602_v51 = vadd.f32 %v937_v45, %v601_v49 }
 0x343   : > { %v939_v52 = vpop.eup %938  ;;  %v576_v53 = vpop.f32.mrf.mxu0 }
 0x344   : > { %v614_v55 = vmul.f32 %v939_v52, %v595_v46  ;;  %v577_v56 = vadd.f32 %v576_v53, %v540_v34  ;;  %v606_v57 = vsel %vm605_vm10, %v937_v45, %v602_v51  ;;  %vm619_vm12 = vweird.f32 %v939_v52 }
 0x345   : > { %v1111_v58 = vsel %vm608_vm11, %v610_v54, %v606_v57  ;;  %vm620_vm14 = vmor %vm618_vm13, %vm619_vm12 }
 0x346   : > { %v615_v59 = vsub.f32 1.0, %v614_v55  ;;  %v890_v60 = vmul.f32 -1.442695, %v577_v56  ;;  %v658_v61 = vmul.f32 %v1111_v58, %v1033_v8  ;;  %v747_v57 = vsub.f32 1.0, %v1111_v58 }
 0x348   : > { %940 = vpow2.f32 %v890_v60  ;;  %892 = vmatmul.msk.f32.vlgmr.msrb.gmra.mxu3 %vm313_vm2, %v658_v61  ;;  %v616_v63 = vmul.f32 %v939_v52, %v615_v59 }
 0x34a   : > { %v617_v1 = vadd.f32 %v939_v52, %v616_v63 }
 0x34b   : > { %v579_v2 = vpop.f32.mrf.mxu0 }
 0x34c   : > { %v580_v4 = vadd.f32 %v579_v2, %v540_v34  ;;  %v621_v5 = vsel %vm620_vm14, %v939_v52, %v617_v1 }
 0x34d   : > { %v1116_v6 = vsel %vm623_vm15, %v625_v3, %v621_v5 }
 0x34e   : > { %v941_v7 = vpop.eup %940  ;;  %v891_v9 = vmul.f32 -1.442695, %v580_v4  ;;  %v659_v11 = vmul.f32 %v1116_v6, %v1040_v10 }
 0x34f   : > { %v596_v14 = vadd.f32 1.0, %v941_v7 }
 0x350   : > { %942 = vpow2.f32 %v891_v9  ;;  %893 = vmatmul.msk.f32.gmra.mxu3 %vm313_vm2, %v659_v11 }
 0x351   : > { %944 = vrcp.f32 %v596_v14  ;;  %v639_v22 = vand.u32 2147483648, %v596_v14  ;;  %v637_v26 = vand.u32 2147483647, %v596_v14  ;;  %vm633_vm1 = vweird.f32 %v596_v14 }
 0x353   : > { %v640_v29 = vor.u32 1.1754944e-38, %v639_v22  ;;  %vm638_vm4 = vcmp.eq.f32.partialorder %v637_v26, 8.507059e+37 }
 0x356   : > { %v943_v17 = vpop.eup %942 }
 0x357   : > { %v945_v18 = vpop.eup %944  ;;  %v597_v19 = vadd.f32 1.0, %v943_v17 }
 0x358   : > { %v629_v20 = vmul.f32 %v945_v18, %v596_v14  ;;  %vm634_vm0 = vweird.f32 %v945_v18 }
 0x359   : > { %946 = vrcp.f32 %v597_v19  ;;  %vm635_vm3 = vmor %vm633_vm1, %vm634_vm0  ;;  %v654_v37 = vand.u32 2147483648, %v597_v19  ;;  %v652_v39 = vand.u32 2147483647, %v597_v19  ;;  %vm648_vm6 = vweird.f32 %v597_v19 }
 0x35a   : > { %v630_v21 = vsub.f32 1.0, %v629_v20 }
 0x35b   : > { %v655_v41 = vor.u32 1.1754944e-38, %v654_v37  ;;  %vm653_vm8 = vcmp.eq.f32.partialorder %v652_v39, 8.507059e+37 }
 0x35c   : > { %v631_v25 = vmul.f32 %v945_v18, %v630_v21 }
 0x35e   : > { %v632_v27 = vadd.f32 %v945_v18, %v631_v25 }
 0x35f   : > { %v947_v28 = vpop.eup %946 }
 0x360   : > { %v644_v31 = vmul.f32 %v947_v28, %v597_v19  ;;  %v636_v33 = vsel %vm635_vm3, %v945_v18, %v632_v27  ;;  %vm649_vm5 = vweird.f32 %v947_v28 }
 0x361   : > { %v1121_v34 = vsel %vm638_vm4, %v640_v29, %v636_v33  ;;  %vm650_vm7 = vmor %vm648_vm6, %vm649_vm5 }
 0x362   : > { %v645_v35 = vsub.f32 1.0, %v644_v31  ;;  %v660_v36 = vmul.f32 %v1121_v34, %v1046_v12  ;;  %v749_v4 = vsub.f32 1.0, %v1121_v34 }
 0x364   : > { %894 = vmatmul.msk.f32.gmra.mxu3 %vm313_vm2, %v660_v36  ;;  %v646_v38 = vmul.f32 %v947_v28, %v645_v35 }
 0x366   : > { %v647_v40 = vadd.f32 %v947_v28, %v646_v38 }
 0x368   : > { %v651_v42 = vsel %vm650_vm7, %v947_v28, %v647_v40 }
 0x369   : > { %v656_v43 = vsel %vm653_vm8, %v655_v41, %v651_v42 }
 0x36a   : > { %v661_v44 = vmul.f32 %v656_v43, %v1050_v13  ;;  %v750_v7 = vsub.f32 1.0, %v656_v43 }
 0x36c   : > { %895 = vmatmul.msk.f32.gmra.mxu3 %vm313_vm2, %v661_v44 }
 0x3cb   : > { %v695_v45 = vpop.f32.mrf.mxu3 }
 0x3cc   : > { %v696_v46 = vadd.f32 %v695_v45, %v664_v16 }
 0x3ce   : > { %711 = vrot.lane.b32.xlu0 %v696_v46, %s966_s9 }
 0x3d3   : > { %v698_v47 = vpop.f32.mrf.mxu3 }
 0x3d4   : > { %v699_v15 = vadd.f32 %v698_v47, %v664_v16 }
 0x3d6   : > { %713 = vrot.lane.b32.xlu1 %v699_v15, %s966_s9 }
 0x3de   : > { %733 = vrot.lane.b32.xlu1 %v1040_v10, %s966_s9 }
 0x3e7   : > { %v701_v48 = vpop.f32.mrf.mxu3 }
 0x3e8   : > { %v702_v49 = vadd.f32 %v701_v48, %v664_v16 }
 0x3ea   : > { %715 = vrot.lane.b32.xlu2 %v702_v49, %s966_s9 }
 0x3ef   : > { %v704_v50 = vpop.f32.mrf.mxu3 }
 0x3f0   : > { %v705_v51 = vadd.f32 %v704_v50, %v664_v16 }
 0x3f2   : > { %731 = vrot.lane.b32.xlu2 %v1033_v8, %s966_s9  ;;  %717 = vrot.lane.b32.xlu0 %v705_v51, %s966_s9 }
 0x3fa   : > { %737 = vrot.lane.b32.xlu2 %v1050_v13, %s966_s9  ;;  %735 = vrot.lane.b32.xlu0 %v1046_v12, %s966_s9  ;;  %v748_v13 = vsub.f32 1.0, %v1116_v6 }
 0x440   : > { %v712_v52 = vpop.permute.xlu0 %711 }
 0x441   : > { %v723_v53 = vadd.f32 %v712_v52, %v1065_v23 }
 0x443   : > { %948 = vtanh.f32 %v723_v53 }
 0x444   : > { %v716_v54 = vpop.permute.xlu2 %715 }
 0x448   : > { %v714_v55 = vpop.permute.xlu1 %713 }
 0x449   : > { %v724_v10 = vadd.f32 %v714_v55, %v1067_v24  ;;  %v949_v56 = vpop.eup %948  ;;  %v725_v24 = vadd.f32 %v716_v54, %v1078_v30 }
 0x44a   : > { %v751_v60 = vmul.f32 %v949_v56, %v747_v57 }
 0x44b   : > { %950 = vtanh.f32 %v724_v10 }
 0x44c   : > { %v732_v59 = vpop.permute.xlu2 %731  ;;  %952 = vtanh.f32 %v725_v24 }
 0x44d   : > { %v743_v8 = vmul.f32 %v732_v59, %v1111_v58 }
 0x44f   : > { %v755_v61 = vadd.f32 %v751_v60, %v743_v8 }
 0x450   : > { %v734_v12 = vpop.permute.xlu1 %733 }
 0x451   : > { %v951_v62 = vpop.eup %950  ;;  %v744_v23 = vmul.f32 %v734_v12, %v1116_v6  ;;  %763 = vrot.lane.b32.xlu1 %v755_v61, %s965_s8 }
 0x452   : > { %v752_v63 = vmul.f32 %v951_v62, %v748_v13  ;;  %v953_v2 = vpop.eup %952 }
 0x453   : > { %v753_v9 = vmul.f32 %v953_v2, %v749_v4 }
 0x454   : > { %v756_v0 = vadd.f32 %v752_v63, %v744_v23  ;;  %v738_v3 = vpop.permute.xlu2 %737 }
 0x455   : > { %v746_v14 = vmul.f32 %v738_v3, %v656_v43 }
 0x456   : > { %765 = vrot.lane.b32.xlu0 %v756_v0, %s965_s8 }
 0x464   : > { %v718_v1 = vpop.permute.xlu0 %717 }
 0x465   : > { %v726_v58 = vadd.f32 %v718_v1, %v1083_v32 }
 0x467   : > { %954 = vtanh.f32 %v726_v58 }
 0x46c   : > { %v736_v5 = vpop.permute.xlu0 %735 }
 0x46d   : > { %v955_v6 = vpop.eup %954  ;;  %v745_v11 = vmul.f32 %v736_v5, %v1121_v34 }
 0x46e   : > { %v754_v17 = vmul.f32 %v955_v6, %v750_v7 }
 0x46f   : > { %v757_v18 = vadd.f32 %v753_v9, %v745_v11 }
 0x470   : > { %v758_v19 = vadd.f32 %v754_v17, %v746_v14 }
 0x471   : > { %767 = vrot.lane.b32.xlu2 %v757_v18, %s965_s8 }
 0x472   : > { %769 = vrot.lane.b32.xlu1 %v758_v19, %s965_s8 }
 0x4c3   : > { %v764_v30 = vpop.permute.xlu1 %763 }
 0x4c4   : > { %775 = vst.msk [vmem:[#allocation2] sm:$0xff] %vm313_vm2, %v764_v30 }
 0x4c8   : > { %v766_v32 = vpop.permute.xlu0 %765 }
 0x4c9   : > { %776 = vst.msk [vmem:[#allocation2 + $0x8] sm:$0xff] %vm313_vm2, %v766_v32 }
 0x4cb   : > { %v768_v20 = vpop.permute.xlu2 %767 }
 0x4cc   : > { %777 = vst.msk [vmem:[#allocation2 + $0x10] sm:$0xff] %vm313_vm2, %v768_v20 }
 0x4e1   : > { %782 = sbr.rel (%p896_p5) target bundleno = 1258 (0x4ea), region = 44 }
 0x4e4   : > { %v770_v21 = vpop.permute.xlu1 %769 }
 0x4e5   : > { %778 = vst.msk [vmem:[#allocation2 + $0x18] sm:$0xff] %vm313_vm2, %v770_v21 }
 0x4e6   : > { %783 = vst.msk [vmem:[%s1174_s4] sm:$0xff] %vm313_vm2, %v764_v30 }
 0x4e7   : > { %784 = vst.msk [vmem:[%s1174_s4 + $0x8] sm:$0xff] %vm313_vm2, %v766_v32 }
 0x4e8   : > { %785 = vst.msk [vmem:[%s1174_s4 + $0x10] sm:$0xff] %vm313_vm2, %v768_v20 }
 0x4e9   : > { %786 = vst.msk [vmem:[%s1174_s4 + $0x18] sm:$0xff] %vm313_vm2, %v770_v21 }
 0x4ea PF: > { %s14_s15 = sadd.s32 1, %s962_s15  }
 0x4eb   : > { %p11_p6 = scmp.ge.s32.totalorder %s14_s15, 6  }
 0x4ed   :  { %13 = sbr.rel (!%p11_p6) target bundleno = 1 (0x1), region = 80 }

// kernel: abcgru_forward.3
= control target key start
LH: loop header
LB: loop body
LE: loop exit
PB: predicated region body
PF: predicated region fallthrough
CT: control target
= control target key end

     0   :  { %s1200_s21 = smov 0   ;;  %s1453_s0 = inlined_call_operand.vmem [shape: f32[32,32], index: 0, kind: input, shape index: {}]   ;;  %s1454_s1 = inlined_call_operand.vmem [shape: f32[3,2,8,64], index: 1, kind: input, shape index: {}]   ;;  %s1455_s2 = inlined_call_operand.vmem [shape: f32[3,64,32], index: 2, kind: input, shape index: {}]   ;;  %s1456_s3 = inlined_call_operand.vmem [shape: f32[3,3,64], index: 3, kind: input, shape index: {}]   ;;  %s1457_s4 = inlined_call_operand.vmem [shape: f32[3,32,8], index: 4, kind: input, shape index: {}]   ;;  %s1458_s5 = inlined_call_operand.vmem [shape: f32[3,1,8], index: 5, kind: input, shape index: {}]   ;;  %s1459_s6 = inlined_call_operand.vmem [shape: f32[32,24], index: 6, kind: output, shape index: {}]  }
   0x1 LB: > { %s1206_s22 = sadd.s32 4294967295, %s1158_s21   ;;  %p1038_p0 = scmp.ge.s32.totalorder %s1158_s21, 1  ;;  %s1158_s21 = sphi %s1200_s21, %s16_s21  }
   0x2   : > { %p244_p1 = scmp.lt.s32.totalorder %s1158_s21, 4 }
   0x4   : > { %p245_p2 = pnand %p1038_p0, %p244_p1 }
   0x5   : > { %p286_p3 = scmp.lt.s32.totalorder (!%p245_p2), %s1206_s22, 2  ;;  %p1046_p4 = scmp.ne.s32.totalorder (!%p245_p2), %s1206_s22, 0 }
   0x6   : > { %248 = sbr.rel (%p245_p2) target bundleno = 2046 (0x7fe), region = 44 }
   0xb   : > { %s1212_s23 = scalar_select %p286_p3, %s1206_s22, 2 }
   0xd   : > { %s1089_s24 = sshll.u32 %s1212_s23, 4  ;;  %s1090_s25 = sshll.u32 %s1212_s23, 6 }
   0xe   : > { %s1219_s28 = scalar_lea.vmem %s1454_s1, %s1089_s24  ;;  %s1224_s7 = scalar_lea.vmem %s1455_s2, %s1090_s25 }
   0xf   : > { %s1043_s8 = sshll.u32 %s1212_s23, 2  ;;  %s1091_s9 = sshll.u32 %s1212_s23, 5 }
  0x10   : > { %s1231_s12 = scalar_lea.vmem %s1456_s3, %s1043_s8  ;;  %s1236_s15 = scalar_lea.vmem %s1457_s4, %s1091_s9 }
  0x11   : > { %s307_s18 = scalar_lea.vmem %s1458_s5, %s1212_s23  ;;  %311 = sbr.rel (%p1046_p4) target bundleno = 31 (0x1f), region = 48 }
  0x16   : > { %v312_v0 = vld [vmem:[%s1453_s0] sm:$0xff]  ;;  %vm316_vm0 = vcmask 261120   ;;  %v313_v1 = vld [vmem:[%s1453_s0 + $0x8] sm:$0xff]  ;;  %v314_v2 = vld [vmem:[%s1453_s0 + $0x10] sm:$0xff]  ;;  %vm321_vm1 = vcmask 64512   ;;  %v1160_v4 = vmov 0.0  }
  0x17   : > { %317 = vst.msk [vmem:[#allocation2] sm:$0xff] %vm316_vm0, %v312_v0  ;;  %v315_v3 = vld [vmem:[%s1453_s0 + $0x18] sm:$0xff] }
  0x18   : > { %318 = vst.msk [vmem:[#allocation2 + $0x8] sm:$0xff] %vm316_vm0, %v313_v1 }
  0x19   : > { %319 = vst.msk [vmem:[#allocation2 + $0x10] sm:$0xff] %vm316_vm0, %v314_v2 }
  0x1a   : > { %320 = vst.msk [vmem:[#allocation2 + $0x18] sm:$0xff] %vm316_vm0, %v315_v3 }
  0x1b   : > { %322 = vst.msk [vmem:[#allocation3] sm:$0xff] %vm321_vm1, %v1160_v4 }
  0x1c   : > { %323 = vst.msk [vmem:[#allocation3 + $0x8] sm:$0xff] %vm321_vm1, %v1160_v4 }
  0x1d   : > { %324 = vst.msk [vmem:[#allocation3 + $0x10] sm:$0xff] %vm321_vm1, %v1160_v4 }
  0x1e   : > { %325 = vst.msk [vmem:[#allocation3 + $0x18] sm:$0xff] %vm321_vm1, %v1160_v4 }
  0x1f PF: > { %v340_v5 = vld [vmem:[%s1224_s7 + $0x18] sm:$0xff]  ;;  %v339_v6 = vld [vmem:[%s1224_s7 + $0x10] sm:$0xff]  ;;  %v338_v7 = vld [vmem:[%s1224_s7 + $0x8] sm:$0xff]  ;;  %vm347_vm2 = vcmask 64512   ;;  %vm390_vm3 = vcmask 261120   ;;  %vm473_vm5 = vcmask 130048  }
  0x20   : > { %1092 = vmatpush.msra.mxu2 %v340_v5  ;;  %415 = vmatpush.msra.mxu1 %v340_v5  ;;  %v334_v8 = vld [vmem:[%s1219_s28] sm:$0xff]  ;;  %v1262_v12 = vld [vmem:[#allocation2 + $0x8] sm:$0xff]  ;;  %v1271_v14 = vld [vmem:[#allocation2 + $0x10] sm:$0xff]  ;;  %s1161_s8 = smov 96   ;;  %s1162_s9 = smov 32  }
  0x21   : > { %v337_v11 = vld [vmem:[%s1224_s7] sm:$0xff]  ;;  %375 = vmatpush.msra.mxu0 %v334_v8  ;;  %v1276_v15 = vld [vmem:[#allocation2 + $0x18] sm:$0xff] }
  0x22   : > { %1093 = vmatpush.msra.mxu2 %v339_v6  ;;  %416 = vmatpush.msra.mxu1 %v339_v6  ;;  %v326_v9 = vld [vmem:[#allocation3] sm:$0xff] }
  0x23   : > { %v327_v10 = vld [vmem:[#allocation3 + $0x8] sm:$0xff]  ;;  %v1264_v13 = vld [vmem:[#allocation2] sm:$0xff]  ;;  %1048 = vmatmul.msk.f32.vlgmr.msra.gmra.mxu0 %vm347_vm2, %v326_v9 }
  0x24   : > { %1096 = vmatpush.msra.mxu3 %v327_v10  ;;  %1094 = vmatpush.msra.mxu2 %v338_v7  ;;  %v1281_v16 = vld [vmem:[%s1231_s12] sm:$0x7]  ;;  %v328_v39 = vld [vmem:[#allocation3 + $0x10] sm:$0xff] }
  0x25   : > { %417 = vmatpush.msra.mxu1 %v338_v7  ;;  %v1284_v17 = vperm.slane %v1281_v16, 1  ;;  %v346_v22 = vperm.slane %v1281_v16, 0  ;;  %v329_v40 = vld [vmem:[#allocation3 + $0x18] sm:$0xff] }
  0x26   : > { %1097 = vmatpush.msra.mxu3 %v326_v9  ;;  %1095 = vmatpush.msra.mxu2 %v337_v11 }
  0x27   : > { %418 = vmatpush.msra.mxu1 %v337_v11  ;;  %1053 = vmatmul.msk.f32.vlgmr.msra.gmra.mxu2 %vm390_vm3, %v1262_v12 }
  0x28   : > { %1052 = vmatmul.msk.f32.vlgmr.msra.gmra.mxu1 %vm390_vm3, %v1264_v13 }
  0x29   : > { %516 = vmatpush.msrb.mxu1 %v327_v10 }
  0x2b   : > { %517 = vmatpush.msrb.mxu1 %v326_v9  ;;  %1049 = vmatmul.msk.f32.gmra.mxu0 %vm347_vm2, %v327_v10 }
  0x2f   : > { %1054 = vmatmul.msk.f32.gmra.mxu2 %vm390_vm3, %v1271_v14 }
  0x33   : > { %1050 = vmatmul.msk.f32.gmra.mxu0 %vm347_vm2, %v328_v39 }
  0x37   : > { %1055 = vmatmul.msk.f32.gmra.mxu2 %vm390_vm3, %v1276_v15 }
  0x3b   : > { %1051 = vmatmul.msk.f32.gmra.mxu0 %vm347_vm2, %v329_v40 }
  0xa0   : > { %v377_v21 = vpop.f32.mrf.mxu0 }
  0xa1   : > { %v1290_v24 = vadd.f32 %v377_v21, %v346_v22 }
  0xa5   : > { %v420_v19 = vpop.f32.mrf.mxu1 }
  0xa6   : > { %v421_v23 = vadd.f32 %v420_v19, %v1284_v17 }
  0xa8   : > { %v380_v25 = vpop.f32.mrf.mxu0 }
  0xa9   : > { %v1295_v26 = vadd.f32 %v380_v25, %v346_v22 }
  0xaa   : > { %v423_v18 = vpop.f32.mrf.mxu2 }
  0xab   : > { %v424_v20 = vadd.f32 %v423_v18, %v1284_v17 }
  0xad   : > { %1056 = vmatpush.xpose.msk.msrb.mxu2 %vm390_vm3, %v424_v20 }
  0xb0   : > { %v383_v49 = vpop.f32.mrf.mxu0 }
  0xb1   : > { %1057 = vmatpush.xpose.msk.msrb.mxu2 %vm390_vm3, %v421_v23  ;;  %v1309_v50 = vadd.f32 %v383_v49, %v346_v22 }
  0xb2   : > { %v426_v27 = vpop.f32.mrf.mxu2 }
  0xb3   : > { %v427_v30 = vadd.f32 %v426_v27, %v1284_v17 }
  0xb4   : > { %1058 = vmatmul.msk.f32.vlgmr.msrb.gmra.mxu2 %vm390_vm3, %v1290_v24 }
  0xb5   : > { %608 = vmatpush.msra.mxu2 %v329_v40 }
  0xb7   : > { %609 = vmatpush.msra.mxu2 %v328_v39 }
  0xb8   : > { %v386_v51 = vpop.f32.mrf.mxu0 }
  0xb9   : > { %v1313_v52 = vadd.f32 %v386_v51, %v346_v22  ;;  %v1047_v22 = vld [vmem:[%s1219_s28 + $0x8] sm:$0xff] }
  0xba   : > { %v429_v28 = vpop.f32.mrf.mxu2  ;;  %645 = vmatpush.msrb.mxu0 %v1047_v22 }
  0xbb   : > { %v430_v29 = vadd.f32 %v429_v28, %v1284_v17 }
  0xbc   : > { %1059 = vmatmul.msk.f32.gmra.mxu2 %vm390_vm3, %v1295_v26 }
  0xbd   : > { %1062 = vmatpush.xpose.msk.msrb.mxu3 %vm390_vm3, %v430_v29 }
  0xc1   : > { %1063 = vmatpush.xpose.msk.msrb.mxu3 %vm390_vm3, %v427_v30 }
 0x137   : > { %v461_v31 = vpop.f32.mrf.mxu2 }
 0x138   : > { %v469_v32 = vmul.f32 0.01, %v461_v31  ;;  %vm467_vm4 = vcmp.gt.f32.partialorder %v461_v31, 0.0 }
 0x13a   : > { %v471_v33 = vsel %vm467_vm4, %v461_v31, %v469_v32  ;;  %v344_v31 = vld [vmem:[%s1224_s7 + $0x38] sm:$0xff]  ;;  %v343_v32 = vld [vmem:[%s1224_s7 + $0x30] sm:$0xff] }
 0x13b   : > { %v474_v34 = vsel %vm473_vm5, %v471_v33, -inf }
 0x13c   : > { %475 = vmax.xlane.f32.xlu1 %v474_v34  ;;  %v342_v34 = vld [vmem:[%s1224_s7 + $0x28] sm:$0xff] }
 0x13f   : > { %v464_v35 = vpop.f32.mrf.mxu2 }
 0x140   : > { %v470_v36 = vmul.f32 0.01, %v464_v35  ;;  %vm468_vm6 = vcmp.gt.f32.partialorder %v464_v35, 0.0 }
 0x142   : > { %v472_v37 = vsel %vm468_vm6, %v464_v35, %v470_v36  ;;  %v617_v35 = vperm.slane %v1281_v16, 2  ;;  %v341_v36 = vld [vmem:[%s1224_s7 + $0x20] sm:$0xff] }
 0x143   : > { %v477_v38 = vsel %vm473_vm5, %v472_v37, -inf }
 0x144   : > { %478 = vmax.xlane.f32.xlu0 %v477_v38 }
 0x1af   : > { %v476_v54 = vpop.xlane.xlu1 %475 }
 0x1b0   : > { %v480_v57 = vsub.f32 %v471_v33, %v476_v54 }
 0x1b2   : > { %v482_v60 = vmul.f32 1.442695, %v480_v57 }
 0x1b7   : > { %v479_v41 = vpop.xlane.xlu0 %478 }
 0x1b8   : > { %v481_v42 = vsub.f32 %v472_v37, %v479_v41 }
 0x1ba   : > { %v484_v43 = vmul.f32 1.442695, %v481_v42 }
 0x1bc   : > { %1112 = vpow2.f32 %v484_v43 }
 0x1c2   : > { %v1113_v44 = vpop.eup %1112 }
 0x1c3   : > { %v489_v45 = vsel %vm473_vm5, %v1113_v44, 0.0 }
 0x1c4   : > { %490 = vadd.xlane.f32.xlu0 %v489_v45 }
 0x237   : > { %v491_v46 = vpop.xlane.xlu0 %490 }
 0x238   : > { %1114 = vrcp.f32 %v491_v46 }
 0x239   : > { %1116 = vpow2.f32 %v482_v60 }
 0x23e   : > { %v1115_v47 = vpop.eup %1114 }
 0x23f   : > { %v495_v48 = vmul.f32 %v1115_v47, %v1113_v44  ;;  %v1117_v1 = vpop.eup %1116 }
 0x240   : > { %v486_v2 = vsel %vm473_vm5, %v1117_v1, 0.0 }
 0x241   : > { %1061 = vmatmul.msk.f32.vlgmr.msra.gmra.mxu3 %vm473_vm5, %v495_v48 }
 0x242   : > { %767 = vmatpush.msra.mxu3 %v344_v31 }
 0x244   : > { %768 = vmatpush.msra.mxu3 %v343_v32 }
 0x246   : > { %769 = vmatpush.msra.mxu3 %v342_v34 }
 0x248   : > { %770 = vmatpush.msra.mxu3 %v341_v36 }
 0x249   : > { %1064 = vmatmul.msk.f32.vlgmr.msrb.gmra.mxu3 %vm390_vm3, %v1309_v50 }
 0x251   : > { %1065 = vmatmul.msk.f32.gmra.mxu3 %vm390_vm3, %v1313_v52 }
 0x2c4   : > { %v522_v53 = vpop.f32.mrf.mxu3 }
 0x2cc   : > { %v554_v55 = vpop.f32.mrf.mxu3 }
 0x2cd   : > { %vm560_vm7 = vcmp.gt.f32.partialorder %v554_v55, 0.0  ;;  %v562_v56 = vmul.f32 0.01, %v554_v55 }
 0x2cf   : > { %v564_v58 = vsel %vm560_vm7, %v554_v55, %v562_v56 }
 0x2d0   : > { %v566_v59 = vsel %vm473_vm5, %v564_v58, -inf }
 0x2d1   : > { %567 = vmax.xlane.f32.xlu1 %v566_v59 }
 0x2d4   : > { %v557_v61 = vpop.f32.mrf.mxu3 }
 0x2d5   : > { %v563_v62 = vmul.f32 0.01, %v557_v61  ;;  %vm561_vm8 = vcmp.gt.f32.partialorder %v557_v61, 0.0 }
 0x2d7   : > { %v565_v63 = vsel %vm561_vm8, %v557_v61, %v563_v62 }
 0x2d8   : > { %v569_v0 = vsel %vm473_vm5, %v565_v63, -inf }
 0x2d9   : > { %570 = vmax.xlane.f32.xlu2 %v569_v0 }
 0x2e1   : > { %487 = vadd.xlane.f32.xlu2 %v486_v2 }
 0x2f9   : > { %740 = vrot.lane.b32.xlu2 %v1284_v17, %s1161_s8 }
 0x301   : > { %808 = vrot.lane.b32.xlu2 %v1264_v13, %s1162_s9 }
 0x309   : > { %810 = vrot.lane.b32.xlu2 %v1262_v12, %s1162_s9 }
 0x311   : > { %814 = vrot.lane.b32.xlu2 %v1276_v15, %s1162_s9 }
 0x344   : > { %v568_v3 = vpop.xlane.xlu1 %567 }
 0x345   : > { %v572_v4 = vsub.f32 %v564_v58, %v568_v3 }
 0x347   : > { %v574_v5 = vmul.f32 1.442695, %v572_v4 }
 0x349   : > { %1118 = vpow2.f32 %v574_v5 }
 0x34c   : > { %v571_v6 = vpop.xlane.xlu2 %570 }
 0x34d   : > { %v573_v7 = vsub.f32 %v565_v63, %v571_v6 }
 0x34f   : > { %v1119_v8 = vpop.eup %1118  ;;  %v576_v9 = vmul.f32 1.442695, %v573_v7 }
 0x350   : > { %v578_v10 = vsel %vm473_vm5, %v1119_v8, 0.0 }
 0x351   : > { %1120 = vpow2.f32 %v576_v9  ;;  %579 = vadd.xlane.f32.xlu0 %v578_v10 }
 0x354   : > { %v488_v11 = vpop.xlane.xlu2 %487 }
 0x355   : > { %1122 = vrcp.f32 %v488_v11 }
 0x357   : > { %v1121_v18 = vpop.eup %1120 }
 0x358   : > { %v581_v19 = vsel %vm473_vm5, %v1121_v18, 0.0 }
 0x359   : > { %582 = vadd.xlane.f32.xlu1 %v581_v19 }
 0x35b   : > { %v1123_v20 = vpop.eup %1122 }
 0x35c   : > { %v494_v21 = vmul.f32 %v1123_v20, %v1117_v1 }
 0x35e   : > { %1060 = vmatmul.msk.f32.vlgmr.msrb.gmra.mxu1 %vm473_vm5, %v494_v21 }
 0x3c4   : > { %v580_v23 = vpop.xlane.xlu0 %579 }
 0x3c5   : > { %1124 = vrcp.f32 %v580_v23 }
 0x3cb   : > { %v1125_v25 = vpop.eup %1124 }
 0x3cc   : > { %v586_v27 = vmul.f32 %v1125_v25, %v1119_v8  ;;  %v583_v17 = vpop.xlane.xlu1 %582 }
 0x3cd   : > { %1126 = vrcp.f32 %v583_v17 }
 0x3ce   : > { %1066 = vmatmul.msk.f32.vlgmr.msra.gmra.mxu2 %vm473_vm5, %v586_v27 }
 0x3d3   : > { %v1127_v28 = vpop.eup %1126 }
 0x3d4   : > { %v587_v29 = vmul.f32 %v1127_v28, %v1121_v18 }
 0x3d6   : > { %1067 = vmatmul.msk.f32.gmra.mxu2 %vm473_vm5, %v587_v29 }
 0x3db   : > { %v519_v30 = vpop.f32.mrf.mxu1 }
 0x3dc   : > { %1068 = vmatmul.msk.f32.vlgmr.msrb.gmra.mxu0 %vm347_vm2, %v519_v30 }
 0x3e4   : > { %1069 = vmatmul.msk.f32.gmra.mxu0 %vm347_vm2, %v522_v53 }
 0x451   : > { %v611_v33 = vpop.f32.mrf.mxu2 }
 0x452   : > { %1070 = vmatmul.msk.f32.gmra.mxu0 %vm347_vm2, %v611_v33 }
 0x459   : > { %v614_v37 = vpop.f32.mrf.mxu2  ;;  %v647_v38 = vpop.f32.mrf.mxu0 }
 0x45a   : > { %v648_v39 = vadd.f32 %v647_v38, %v617_v35  ;;  %1071 = vmatmul.msk.f32.gmra.mxu0 %vm347_vm2, %v614_v37 }
 0x45c   : > { %v1072_v40 = vmul.f32 -1.442695, %v648_v39 }
 0x45e   : > { %1128 = vpow2.f32 %v1072_v40 }
 0x461   : > { %v650_v41 = vpop.f32.mrf.mxu0 }
 0x462   : > { %v651_v42 = vadd.f32 %v650_v41, %v617_v35 }
 0x464   : > { %v1129_v43 = vpop.eup %1128  ;;  %v1073_v44 = vmul.f32 -1.442695, %v651_v42 }
 0x465   : > { %v671_v45 = vadd.f32 1.0, %v1129_v43 }
 0x466   : > { %1130 = vpow2.f32 %v1073_v44  ;;  %v741_v44 = vpop.permute.xlu2 %740 }
 0x467   : > { %1132 = vrcp.f32 %v671_v45  ;;  %v686_v51 = vand.u32 2147483648, %v671_v45  ;;  %v684_v54 = vand.u32 2147483647, %v671_v45  ;;  %vm680_vm10 = vweird.f32 %v671_v45 }
 0x469   : > { %v687_v57 = vor.u32 1.1754944e-38, %v686_v51  ;;  %vm685_vm12 = vcmp.eq.f32.partialorder %v684_v54, 8.507059e+37 }
 0x46c   : > { %v1131_v46 = vpop.eup %1130 }
 0x46d   : > { %v1133_v47 = vpop.eup %1132  ;;  %v672_v48 = vadd.f32 1.0, %v1131_v46 }
 0x46e   : > { %v676_v16 = vmul.f32 %v1133_v47, %v671_v45  ;;  %vm681_vm9 = vweird.f32 %v1133_v47  ;;  %v809_v54 = vpop.permute.xlu2 %808 }
 0x46f   : > { %1134 = vrcp.f32 %v672_v48  ;;  %vm682_vm11 = vmor %vm680_vm10, %vm681_vm9  ;;  %v701_v63 = vand.u32 2147483648, %v672_v48  ;;  %v699_v1 = vand.u32 2147483647, %v672_v48  ;;  %vm695_vm14 = vweird.f32 %v672_v48 }
 0x470   : > { %v677_v49 = vsub.f32 1.0, %v676_v16 }
 0x471   : > { %v702_v3 = vor.u32 1.1754944e-38, %v701_v63  ;;  %vm700_vm0 = vcmp.eq.f32.partialorder %v699_v1, 8.507059e+37 }
 0x472   : > { %v678_v53 = vmul.f32 %v1133_v47, %v677_v49 }
 0x474   : > { %v679_v55 = vadd.f32 %v1133_v47, %v678_v53 }
 0x475   : > { %v1135_v56 = vpop.eup %1134 }
 0x476   : > { %v683_v58 = vsel %vm682_vm11, %v1133_v47, %v679_v55  ;;  %v691_v59 = vmul.f32 %v1135_v56, %v672_v48  ;;  %vm696_vm13 = vweird.f32 %v1135_v56 }
 0x477   : > { %v1343_v60 = vsel %vm685_vm12, %v687_v57, %v683_v58  ;;  %vm697_vm15 = vmor %vm695_vm14, %vm696_vm13 }
 0x478   : > { %v735_v61 = vmul.f32 %v1343_v60, %v1264_v13  ;;  %v692_v62 = vsub.f32 1.0, %v691_v59  ;;  %v824_v59 = vsub.f32 1.0, %v1343_v60 }
 0x47a   : > { %1076 = vmatmul.msk.f32.vlgmr.msra.gmra.mxu3 %vm390_vm3, %v735_v61  ;;  %v693_v0 = vmul.f32 %v1135_v56, %v692_v62  ;;  %v811_v61 = vpop.permute.xlu2 %810  ;;  %v820_v62 = vmul.f32 %v809_v54, %v1343_v60 }
 0x47c   : > { %v694_v2 = vadd.f32 %v1135_v56, %v693_v0 }
 0x47e   : > { %v698_v4 = vsel %vm697_vm15, %v1135_v56, %v694_v2 }
 0x47f   : > { %v1348_v5 = vsel %vm700_vm0, %v702_v3, %v698_v4  ;;  %v839_v4 = vld [vmem:[%s1236_s15 + $0x18] sm:$0xff] }
 0x480   : > { %v736_v6 = vmul.f32 %v1348_v5, %v1262_v12  ;;  %v821_v0 = vmul.f32 %v811_v61, %v1348_v5  ;;  %876 = vmatpush.msra.mxu1 %v839_v4 }
 0x482   : > { %1077 = vmatmul.msk.f32.gmra.mxu3 %vm390_vm3, %v736_v6  ;;  %v837_v6 = vld [vmem:[%s1236_s15 + $0x8] sm:$0xff] }
 0x4cf   : > { %v653_v13 = vpop.f32.mrf.mxu0 }
 0x4d0   : > { %v654_v7 = vadd.f32 %v653_v13, %v617_v35  ;;  %v836_v13 = vld [vmem:[%s1236_s15] sm:$0xff] }
 0x4d2   : > { %v1074_v8 = vmul.f32 -1.442695, %v654_v7 }
 0x4d4   : > { %1136 = vpow2.f32 %v1074_v8 }
 0x4d7   : > { %v656_v9 = vpop.f32.mrf.mxu0 }
 0x4d8   : > { %v657_v10 = vadd.f32 %v656_v9, %v617_v35 }
 0x4da   : > { %v1137_v11 = vpop.eup %1136  ;;  %v1075_v18 = vmul.f32 -1.442695, %v657_v10 }
 0x4db   : > { %v673_v19 = vadd.f32 1.0, %v1137_v11 }
 0x4dc   : > { %1138 = vpow2.f32 %v1075_v18 }
 0x4dd   : > { %1140 = vrcp.f32 %v673_v19  ;;  %v716_v12 = vand.u32 2147483648, %v673_v19  ;;  %v714_v17 = vand.u32 2147483647, %v673_v19  ;;  %vm710_vm4 = vweird.f32 %v673_v19 }
 0x4df   : > { %v717_v30 = vor.u32 1.1754944e-38, %v716_v12  ;;  %vm715_vm6 = vcmp.eq.f32.partialorder %v714_v17, 8.507059e+37 }
 0x4e2   : > { %v1139_v20 = vpop.eup %1138 }
 0x4e3   : > { %v1141_v21 = vpop.eup %1140  ;;  %v674_v22 = vadd.f32 1.0, %v1139_v20 }
 0x4e4   : > { %v706_v23 = vmul.f32 %v1141_v21, %v673_v19  ;;  %vm711_vm1 = vweird.f32 %v1141_v21 }
 0x4e5   : > { %1142 = vrcp.f32 %v674_v22  ;;  %vm712_vm5 = vmor %vm710_vm4, %vm711_vm1  ;;  %v731_v36 = vand.u32 2147483648, %v674_v22  ;;  %v729_v38 = vand.u32 2147483647, %v674_v22  ;;  %vm725_vm8 = vweird.f32 %v674_v22 }
 0x4e6   : > { %v707_v25 = vsub.f32 1.0, %v706_v23 }
 0x4e7   : > { %v732_v40 = vor.u32 1.1754944e-38, %v731_v36  ;;  %vm730_vm10 = vcmp.eq.f32.partialorder %v729_v38, 8.507059e+37 }
 0x4e8   : > { %v708_v27 = vmul.f32 %v1141_v21, %v707_v25 }
 0x4ea   : > { %v709_v28 = vadd.f32 %v1141_v21, %v708_v27 }
 0x4eb   : > { %v1143_v29 = vpop.eup %1142 }
 0x4ec   : > { %v713_v31 = vsel %vm712_vm5, %v1141_v21, %v709_v28  ;;  %v721_v32 = vmul.f32 %v1143_v29, %v674_v22  ;;  %vm726_vm7 = vweird.f32 %v1143_v29  ;;  %v815_v21 = vpop.permute.xlu2 %814 }
 0x4ed   : > { %v1353_v33 = vsel %vm715_vm6, %v717_v30, %v713_v31  ;;  %vm727_vm9 = vmor %vm725_vm8, %vm726_vm7 }
 0x4ee   : > { %v737_v34 = vmul.f32 %v1353_v33, %v1271_v14  ;;  %v722_v35 = vsub.f32 1.0, %v721_v32  ;;  %v826_v8 = vsub.f32 1.0, %v1353_v33 }
 0x4f0   : > { %1078 = vmatmul.msk.f32.gmra.mxu3 %vm390_vm3, %v737_v34  ;;  %v723_v37 = vmul.f32 %v1143_v29, %v722_v35 }
 0x4f2   : > { %v724_v39 = vadd.f32 %v1143_v29, %v723_v37 }
 0x4f4   : > { %v728_v41 = vsel %vm727_vm9, %v1143_v29, %v724_v39  ;;  %v1111_v29 = vld [vmem:[%s307_s18] ss:$0 sm:$0xff] }
 0x4f5   : > { %v1358_v42 = vsel %vm730_vm10, %v732_v40, %v728_v41 }
 0x4f6   : > { %v738_v43 = vmul.f32 %v1358_v42, %v1276_v15  ;;  %v827_v22 = vsub.f32 1.0, %v1358_v42  ;;  %v823_v25 = vmul.f32 %v815_v21, %v1358_v42 }
 0x4f8   : > { %1079 = vmatmul.msk.f32.gmra.mxu3 %vm390_vm3, %v738_v43 }
 0x4fd   : > { %v772_v45 = vpop.f32.mrf.mxu3 }
 0x4fe   : > { %v773_v46 = vadd.f32 %v772_v45, %v741_v44 }
 0x500   : > { %788 = vrot.lane.b32.xlu0 %v773_v46, %s1162_s9 }
 0x505   : > { %v775_v47 = vpop.f32.mrf.mxu3 }
 0x506   : > { %v776_v48 = vadd.f32 %v775_v47, %v741_v44 }
 0x508   : > { %790 = vrot.lane.b32.xlu1 %v776_v48, %s1162_s9 }
 0x572   : > { %v789_v16 = vpop.permute.xlu0 %788 }
 0x573   : > { %v800_v49 = vadd.f32 %v789_v16, %v1290_v24  ;;  %v778_v51 = vpop.f32.mrf.mxu3 }
 0x574   : > { %v779_v53 = vadd.f32 %v778_v51, %v741_v44 }
 0x575   : > { %1144 = vtanh.f32 %v800_v49 }
 0x576   : > { %792 = vrot.lane.b32.xlu0 %v779_v53, %s1162_s9 }
 0x57a   : > { %v791_v15 = vpop.permute.xlu1 %790 }
 0x57b   : > { %v801_v55 = vadd.f32 %v791_v15, %v1295_v26  ;;  %v781_v56 = vpop.f32.mrf.mxu3  ;;  %v1145_v58 = vpop.eup %1144  ;;  %v825_v26 = vsub.f32 1.0, %v1348_v5 }
 0x57c   : > { %v782_v57 = vadd.f32 %v781_v56, %v741_v44  ;;  %v828_v24 = vmul.f32 %v1145_v58, %v824_v59 }
 0x57d   : > { %1146 = vtanh.f32 %v801_v55 }
 0x57e   : > { %794 = vrot.lane.b32.xlu1 %v782_v57, %s1162_s9  ;;  %812 = vrot.lane.b32.xlu0 %v1271_v14, %s1162_s9  ;;  %v832_v1 = vadd.f32 %v828_v24, %v820_v62  ;;  %v838_v14 = vld [vmem:[%s1236_s15 + $0x10] sm:$0xff] }
 0x57f   : > { %877 = vmatpush.msra.mxu1 %v838_v14 }
 0x581   : > { %878 = vmatpush.msra.mxu1 %v837_v6 }
 0x583   : > { %v1147_v63 = vpop.eup %1146  ;;  %879 = vmatpush.msra.mxu1 %v836_v13 }
 0x584   : > { %v829_v2 = vmul.f32 %v1147_v63, %v825_v26 }
 0x586   : > { %848 = vrot.lane.b32.xlu1 %v832_v1, %s1161_s8  ;;  %v833_v3 = vadd.f32 %v829_v2, %v821_v0 }
 0x588   : > { %850 = vrot.lane.b32.xlu0 %v833_v3, %s1161_s8 }
 0x5e8   : > { %v793_v60 = vpop.permute.xlu0 %792 }
 0x5e9   : > { %v802_v7 = vadd.f32 %v793_v60, %v1309_v50 }
 0x5eb   : > { %1148 = vtanh.f32 %v802_v7 }
 0x5f0   : > { %v795_v5 = vpop.permute.xlu1 %794  ;;  %v813_v9 = vpop.permute.xlu0 %812 }
 0x5f1   : > { %v1149_v10 = vpop.eup %1148  ;;  %v803_v11 = vadd.f32 %v795_v5, %v1313_v52  ;;  %v822_v18 = vmul.f32 %v813_v9, %v1353_v33 }
 0x5f2   : > { %v830_v19 = vmul.f32 %v1149_v10, %v826_v8 }
 0x5f3   : > { %1150 = vtanh.f32 %v803_v11 }
 0x5f4   : > { %v834_v20 = vadd.f32 %v830_v19, %v822_v18 }
 0x5f6   : > { %852 = vrot.lane.b32.xlu2 %v834_v20, %s1161_s8 }
 0x5f8   : > { %v849_v23 = vpop.permute.xlu1 %848 }
 0x5f9   : > { %v1151_v50 = vpop.eup %1150  ;;  %897 = vst.msk [vmem:[#allocation2] sm:$0xff] %vm390_vm3, %v849_v23  ;;  %1080 = vmatmul.msk.f32.vlgmr.msra.gmra.mxu1 %vm390_vm3, %v849_v23 }
 0x5fa   : > { %v851_v52 = vpop.permute.xlu0 %850  ;;  %v831_v12 = vmul.f32 %v1151_v50, %v827_v22 }
 0x5fb   : > { %898 = vst.msk [vmem:[#allocation2 + $0x8] sm:$0xff] %vm390_vm3, %v851_v52 }
 0x5fc   : > { %v835_v27 = vadd.f32 %v831_v12, %v823_v25 }
 0x5fe   : > { %854 = vrot.lane.b32.xlu1 %v835_v27, %s1161_s8 }
 0x601   : > { %1081 = vmatmul.msk.f32.gmra.mxu1 %vm390_vm3, %v851_v52 }
 0x650   : > { %v853_v17 = vpop.permute.xlu2 %852 }
 0x651   : > { %899 = vst.msk [vmem:[#allocation2 + $0x10] sm:$0xff] %vm390_vm3, %v853_v17  ;;  %1082 = vmatmul.msk.f32.gmra.mxu1 %vm390_vm3, %v853_v17 }
 0x670   : > { %v855_v28 = vpop.permute.xlu1 %854 }
 0x671   : > { %900 = vst.msk [vmem:[#allocation2 + $0x18] sm:$0xff] %vm390_vm3, %v855_v28  ;;  %1083 = vmatmul.msk.f32.gmra.mxu1 %vm390_vm3, %v855_v28 }
 0x676   : > { %v881_v30 = vpop.f32.mrf.mxu1 }
 0x677   : > { %v882_v31 = vadd.f32 %v1111_v29, %v881_v30 }
 0x679   : > { %901 = vst.msk [vmem:[#allocation3] sm:$0xff] %vm347_vm2, %v882_v31 }
 0x67e   : > { %v884_v32 = vpop.f32.mrf.mxu1 }
 0x67f   : > { %v885_v33 = vadd.f32 %v1111_v29, %v884_v32 }
 0x681   : > { %902 = vst.msk [vmem:[#allocation3 + $0x8] sm:$0xff] %vm347_vm2, %v885_v33 }
 0x6ce   : > { %v887_v34 = vpop.f32.mrf.mxu1 }
 0x6cf   : > { %v888_v35 = vadd.f32 %v1111_v29, %v887_v34 }
 0x6d1   : > { %903 = vst.msk [vmem:[#allocation3 + $0x10] sm:$0xff] %vm347_vm2, %v888_v35 }
 0x6ed   : > { %907 = sbr.rel (%p1046_p4) target bundleno = 1782 (0x6f6), region = 52 }
 0x6ee   : > { %v890_v36 = vpop.f32.mrf.mxu1 }
 0x6ef   : > { %v891_v37 = vadd.f32 %v1111_v29, %v890_v36 }
 0x6f1   : > { %904 = vst.msk [vmem:[#allocation3 + $0x18] sm:$0xff] %vm347_vm2, %v891_v37 }
 0x6f2   : > { %908 = vst.msk [vmem:[%s1459_s6] sm:$0xff] %vm347_vm2, %v882_v31 }
 0x6f3   : > { %909 = vst.msk [vmem:[%s1459_s6 + $0x8] sm:$0xff] %vm347_vm2, %v885_v33 }
 0x6f4   : > { %910 = vst.msk [vmem:[%s1459_s6 + $0x10] sm:$0xff] %vm347_vm2, %v888_v35 }
 0x6f5   : > { %911 = vst.msk [vmem:[%s1459_s6 + $0x18] sm:$0xff] %vm347_vm2, %v891_v37 }
 0x6f6 PF: > { %p1085_p5 = scmp.ne.s32.totalorder %s1206_s22, 1 }
 0x6f7   : > { %s1163_s17 = smov (!%p1085_p5), 8  }
 0x6f8   : > { %915 = sbr.rel (%p1085_p5) target bundleno = 1914 (0x77a), region = 56 }
 0x6fd   : > { %924 = vrot.lane.b32.xlu1 %v888_v35, %s1163_s17  ;;  %920 = vrot.lane.b32.xlu0 %v882_v31, %s1163_s17  ;;  %vm932_vm3 = vcmask 130112  }
 0x705   : > { %926 = vrot.lane.b32.xlu1 %v891_v37, %s1163_s17  ;;  %922 = vrot.lane.b32.xlu0 %v885_v33, %s1163_s17 }
 0x76f   : > { %v925_v38 = vpop.permute.xlu1 %924  ;;  %v921_v39 = vpop.permute.xlu0 %920 }
 0x770   : > { %935 = vst.msk [vmem:[%s1459_s6 + $0x10] sm:$0xff] %vm932_vm3, %v925_v38 }
 0x771   : > { %933 = vst.msk [vmem:[%s1459_s6] sm:$0xff] %vm932_vm3, %v921_v39 }
 0x777   : > { %v927_v40 = vpop.permute.xlu1 %926  ;;  %v923_v41 = vpop.permute.xlu0 %922 }
 0x778   : > { %936 = vst.msk [vmem:[%s1459_s6 + $0x18] sm:$0xff] %vm932_vm3, %v927_v40 }
 0x779   : > { %934 = vst.msk [vmem:[%s1459_s6 + $0x8] sm:$0xff] %vm932_vm3, %v923_v41 }
 0x77a PF: > { %p1086_p6 = scmp.ne.s32.totalorder %s1206_s22, 2 }
 0x77b   : > { %s1164_s30 = smov (!%p1086_p6), 16  }
 0x77c   : > { %940 = sbr.rel (%p1086_p6) target bundleno = 2046 (0x7fe), region = 60 }
 0x781   : > { %949 = vrot.lane.b32.xlu1 %v888_v35, %s1164_s30  ;;  %945 = vrot.lane.b32.xlu0 %v882_v31, %s1164_s30  ;;  %vm957_vm2 = vcmask 195712  }
 0x789   : > { %951 = vrot.lane.b32.xlu1 %v891_v37, %s1164_s30  ;;  %947 = vrot.lane.b32.xlu0 %v885_v33, %s1164_s30 }
 0x7f3   : > { %v950_v42 = vpop.permute.xlu1 %949  ;;  %v946_v43 = vpop.permute.xlu0 %945 }
 0x7f4   : > { %960 = vst.msk [vmem:[%s1459_s6 + $0x10] sm:$0xff] %vm957_vm2, %v950_v42 }
 0x7f5   : > { %958 = vst.msk [vmem:[%s1459_s6] sm:$0xff] %vm957_vm2, %v946_v43 }
 0x7fb   : > { %v952_v44 = vpop.permute.xlu1 %951  ;;  %v948_v45 = vpop.permute.xlu0 %947 }
 0x7fc   : > { %961 = vst.msk [vmem:[%s1459_s6 + $0x18] sm:$0xff] %vm957_vm2, %v952_v44 }
 0x7fd   : > { %959 = vst.msk [vmem:[%s1459_s6 + $0x8] sm:$0xff] %vm957_vm2, %v948_v45 }
 0x7fe PF: > { %s16_s21 = sadd.s32 1, %s1158_s21  }
 0x7ff   : > { %p13_p7 = scmp.ge.s32.totalorder %s16_s21, 5  }
 0x801   :  { %15 = sbr.rel (!%p13_p7) target bundleno = 1 (0x1), region = 99 }

</bundles_post_ra>
